<compile_context>
chip_gen: v5e
topology: v5e:2x2
jax: 0.10.0
libtpu: 0.0.40
codegen_flags: <defaults>
</compile_context>

<pallas_src>
import functools

import jax
import jax.numpy as jnp
import numpy as np
from jax import lax
from jax.experimental import pallas as pl
from jax.experimental.pallas import tpu as pltpu


# -----------------------------------------------------------------------------
# Fused batch-blocked kernel.
# -----------------------------------------------------------------------------
def fused_cnn_kernel(x_ref, w1b_ref, b1t_ref, s1cat_ref,
                     w2b_ref, b2t_ref, s2cat_ref,
                     fc1w_ref, fc1b_ref, fc2w_ref, fc2b_ref,
                     out_ref, xpad2, c1s, c2s, h2s, fcin):
    f32 = jnp.float32
    K = w1b_ref.shape[0]                      # 5
    pad = (K - 1) // 2                        # 2

    B = out_ref.shape[0]                      # images per grid step
    S1 = x_ref.shape[0] // B                  # H + 4 rows per padded image
    H = S1 - 2 * pad
    H1 = H // 2
    S2 = xpad2.shape[0] // B                  # H/2 + 4
    H2 = H1 // 2
    l1 = w1b_ref.shape[2]                     # W * C1
    p1 = xpad2.shape[1]                       # (W/2) * C1
    l2 = w2b_ref.shape[2]                     # (W/2) * C2
    p2 = h2s.shape[1]                         # (W/4) * C2
    M1 = c1s.shape[0]                         # B*S1 - 4 conv1 output rows
    M2 = c2s.shape[0]                         # B*S2 - 4 conv2 output rows
    n1h = B * (S1 // 2) - pad                 # row-pooled rows, stage 1
    n2h = h2s.shape[0]                        # row-pooled rows, stage 2

    # ---- stage 1: conv1 (5x5 'same') as banded matmuls over the image block -
    acc1 = jnp.zeros((M1, l1), f32)
    for kh in range(K):
        acc1 = acc1 + jnp.dot(x_ref[kh:kh + M1, :], w1b_ref[kh],
                              preferred_element_type=f32)
    c1s[...] = acc1

    # 2x2 max-pool: rows via two stride-2 reads, cols via one selector matmul.
    rmax1 = jnp.maximum(c1s[pl.ds(0, n1h, 2), :],
                        c1s[pl.ds(1, n1h, 2), :]) + b1t_ref[...]
    y1 = jnp.dot(rmax1, s1cat_ref[...], preferred_element_type=f32)
    h1 = jnp.maximum(jnp.maximum(y1[:, :p1], y1[:, p1:2 * p1]), 0.0)

    # ---- stage 2: vertical re-padding + conv2 + pool + relu ------------------
    # h1 rows for image b live at [b*(S1//2), b*(S1//2)+H1); seam rows ignored.
    zrow = jnp.zeros((pad, p1), f32)
    for b in range(B):
        base = b * S2
        src = b * (S1 // 2)
        xpad2[base:base + pad, :] = zrow
        xpad2[base + pad:base + pad + H1, :] = h1[src:src + H1, :]
        xpad2[base + pad + H1:base + S2, :] = zrow

    acc2 = jnp.zeros((M2, l2), f32)
    for kh in range(K):
        acc2 = acc2 + jnp.dot(xpad2[kh:kh + M2, :], w2b_ref[kh],
                              preferred_element_type=f32)
    c2s[...] = acc2

    rmax2 = jnp.maximum(c2s[pl.ds(0, n2h, 2), :],
                        c2s[pl.ds(1, n2h, 2), :]) + b2t_ref[...]
    y2 = jnp.dot(rmax2, s2cat_ref[...], preferred_element_type=f32)
    h2s[...] = jnp.maximum(jnp.maximum(y2[:, :p2], y2[:, p2:2 * p2]), 0.0)

    # ---- stage 3: fc1 + relu + fc_logits (lane-dense 128-wide output) -------
    # Gather the H2 pooled rows of each image side by side (NHWC flatten order
    # that the permuted fc1 weights consume): fcin[b, r*p2:(r+1)*p2] = row r.
    for r in range(H2):
        fcin[:, r * p2:(r + 1) * p2] = h2s[pl.ds(r, B, S2 // 2), :]
    z = jnp.maximum(jnp.dot(fcin[...], fc1w_ref[...],
                            preferred_element_type=f32) + fc1b_ref[...], 0.0)
    out_ref[...] = (jnp.dot(z, fc2w_ref[...], preferred_element_type=f32)
                    + fc2b_ref[...]).astype(out_ref.dtype)


# -----------------------------------------------------------------------------
# Host-side (one-time) constant construction.
# -----------------------------------------------------------------------------
def _build_banded_conv_weight(w_hwio, out_w):
    """(K,K,Cin,Cout) HWIO -> (K, out_w*Cin, out_w*Cout) banded matrices.
    Horizontal 'same' padding is folded in (out-of-range taps are dropped)."""
    K, _, cin, cout = np.asarray(w_hwio).shape
    pad = (K - 1) // 2
    w = np.asarray(w_hwio, np.float32)
    banded = np.zeros((K, out_w * cin, out_w * cout), np.float32)
    for kh in range(K):
        for kw in range(K):
            for wo in range(out_w):
                wi = wo + kw - pad
                if 0 <= wi < out_w:
                    banded[kh, wi * cin:(wi + 1) * cin,
                           wo * cout:(wo + 1) * cout] = w[kh, kw]
    return banded


def _build_pool_selector_cat(in_w, c):
    """Fused [even | odd] column-pool selector: (in_w*c, 2*(in_w//2)*c)."""
    p = (in_w // 2) * c
    s = np.zeros((in_w * c, 2 * p), np.float32)
    for wo in range(in_w // 2):
        for ch in range(c):
            s[(2 * wo) * c + ch, wo * c + ch] = 1.0
            s[(2 * wo + 1) * c + ch, p + wo * c + ch] = 1.0
    return s


def prepare_kernel_params(params, input_shape, class_pad=128):
    """Banded conv weights, tiled biases, fused pool selectors, NHWC-permuted
    fc1 weights and 128-lane padded fc_logits weights (built once, host side)."""
    H, W = input_shape
    c1w = np.asarray(params["conv1_w"], np.float32)   # (5,5,cin,c1) HWIO
    c2w = np.asarray(params["conv2_w"], np.float32)   # (5,5,c1,c2)
    c1 = c1w.shape[3]
    c2 = c2w.shape[3]
    W1 = W // 2
    H2, W2 = H // 4, W // 4
    f1 = np.asarray(params["fc1_w"]).shape[1]
    cc = np.asarray(params["fc2_w"]).shape[1]
    assert cc <= class_pad

    # fc1: torch flattens NCHW (c,h,w); the kernel produces NHWC (h,w,c).
    idx_nchw = np.arange(c2 * H2 * W2).reshape(c2, H2, W2)
    perm = np.transpose(idx_nchw, (1, 2, 0)).reshape(-1)

    fc2w_pad = np.zeros((f1, class_pad), np.float32)
    fc2w_pad[:, :cc] = np.asarray(params["fc2_w"], np.float32)
    fc2b_pad = np.zeros((1, class_pad), np.float32)
    fc2b_pad[0, :cc] = np.asarray(params["fc2_b"], np.float32)

    kp = {
        "w1b": _build_banded_conv_weight(c1w, W),
        "b1t": np.tile(np.asarray(params["conv1_b"], np.float32), W)[None, :],
        "s1cat": _build_pool_selector_cat(W, c1),
        "w2b": _build_banded_conv_weight(c2w, W1),
        "b2t": np.tile(np.asarray(params["conv2_b"], np.float32), W1)[None, :],
        "s2cat": _build_pool_selector_cat(W1, c2),
        "fc1w": np.asarray(params["fc1_w"], np.float32)[perm, :],
        "fc1b": np.asarray(params["fc1_b"], np.float32)[None, :],
        "fc2w": fc2w_pad,
        "fc2b": fc2b_pad,
    }
    return {k: jnp.asarray(v, jnp.float32) for k, v in kp.items()}


# -----------------------------------------------------------------------------
# Single fused pallas_call, B_BLK images per grid step.
# -----------------------------------------------------------------------------
@functools.partial(jax.jit, static_argnames=("class_count", "b_blk"))
def forward(kparams, x_nchw, *, class_count, b_blk=4):
    N, cin, H, W = x_nchw.shape
    assert H % 4 == 0 and W % 4 == 0
    K = kparams["w1b"].shape[0]
    pad = (K - 1) // 2
    S1 = H + 2 * pad
    H1 = H // 2
    S2 = H1 + 2 * pad
    lx = W * cin
    l1 = kparams["w1b"].shape[2]
    l2 = kparams["w2b"].shape[2]
    p1 = kparams["s1cat"].shape[1] // 2
    p2 = kparams["s2cat"].shape[1] // 2
    fc1_in = kparams["fc1w"].shape[0]
    cpad = kparams["fc2w"].shape[1]

    nblk = -(-N // b_blk)
    Np = nblk * b_blk
    M1 = b_blk * S1 - (K - 1)
    M2 = b_blk * S2 - (K - 1)
    n2h = b_blk * (S2 // 2) - pad

    # NCHW -> vertically padded, row-flattened (w, cin) image blocks.
    x_rows = jnp.transpose(x_nchw, (0, 2, 3, 1)).reshape(N, H, lx)
    x_rows = jnp.pad(x_rows, ((0, Np - N), (pad, pad), (0, 0)))
    x_blocks = x_rows.reshape(nblk, b_blk * S1, lx)

    def full(shape):
        nd = len(shape)
        return pl.BlockSpec(shape, lambda n: (0,) * nd)   # VMEM-resident consts

    out = pl.pallas_call(
        fused_cnn_kernel,
        out_shape=jax.ShapeDtypeStruct((nblk, b_blk, cpad), jnp.float32),
        grid=(nblk,),
        in_specs=[
            pl.BlockSpec((None, b_blk * S1, lx), lambda n: (n, 0, 0)),
            full(kparams["w1b"].shape), full(kparams["b1t"].shape),
            full(kparams["s1cat"].shape),
            full(kparams["w2b"].shape), full(kparams["b2t"].shape),
            full(kparams["s2cat"].shape),
            full(kparams["fc1w"].shape), full(kparams["fc1b"].shape),
            full(kparams["fc2w"].shape), full(kparams["fc2b"].shape),
        ],
        out_specs=pl.BlockSpec((None, b_blk, cpad), lambda n: (n, 0, 0)),
        scratch_shapes=[
            pltpu.VMEM((b_blk * S2, p1), jnp.float32),   # re-padded stage-2 input
            pltpu.VMEM((M1, l1), jnp.float32),           # conv1 output rows
            pltpu.VMEM((M2, l2), jnp.float32),           # conv2 output rows
            pltpu.VMEM((n2h, p2), jnp.float32),          # pooled stage-2 rows
            pltpu.VMEM((b_blk, fc1_in), jnp.float32),    # fc1 input block
        ],
        compiler_params=pltpu.CompilerParams(
            dimension_semantics=("parallel",)),          # v7x: blocks across 2 TCs
    )(x_blocks, kparams["w1b"], kparams["b1t"], kparams["s1cat"],
      kparams["w2b"], kparams["b2t"], kparams["s2cat"],
      kparams["fc1w"], kparams["fc1b"], kparams["fc2w"], kparams["fc2b"])
    return out.reshape(Np, cpad)[:N, :class_count]


# -----------------------------------------------------------------------------
# Parameters (deterministic, mirroring the module's reset_parameters).
# -----------------------------------------------------------------------------
def init_params(key, input_shape, in_channels, conv1_width, conv2_width,
                fc1_width, class_count):
    H, W = input_shape
    k1, k2, k3, k4, k5 = jax.random.split(key, 5)

    def kaiming(k, shape, fan_in):  # kaiming_normal_, mode='fan_in', relu gain
        return jax.random.normal(k, shape, jnp.float32) * jnp.sqrt(2.0 / fan_in)

    fc1_in = (H // 4) * (W // 4) * conv2_width
    bound = 1.0 / np.sqrt(fc1_width)  # default torch Linear init for fc_logits
    return {
        "conv1_w": kaiming(k1, (5, 5, in_channels, conv1_width), 25 * in_channels),
        "conv1_b": jnp.zeros((conv1_width,), jnp.float32),
        "conv2_w": kaiming(k2, (5, 5, conv1_width, conv2_width), 25 * conv1_width),
        "conv2_b": jnp.zeros((conv2_width,), jnp.float32),
        "fc1_w": kaiming(k3, (fc1_in, fc1_width), fc1_in),   # torch weight.T, NCHW rows
        "fc1_b": jnp.zeros((fc1_width,), jnp.float32),
        "fc2_w": jax.random.uniform(k4, (fc1_width, class_count), jnp.float32,
                                    -bound, bound),
        "fc2_b": jax.random.uniform(k5, (class_count,), jnp.float32, -bound, bound),
    }


# -----------------------------------------------------------------------------
# Pure-JAX reference (same math via lax.conv / reduce_window) for validation.
# -----------------------------------------------------------------------------
def reference_forward(params, x_nchw):
    w1 = jnp.transpose(params["conv1_w"], (3, 2, 0, 1))  # HWIO -> OIHW
    w2 = jnp.transpose(params["conv2_w"], (3, 2, 0, 1))

    def conv(x, w, b):
        y = lax.conv_general_dilated(x, w, (1, 1), ((2, 2), (2, 2)),
                                     dimension_numbers=("NCHW", "OIHW", "NCHW"))
        return y + b[None, :, None, None]

    def pool(x):
        return lax.reduce_window(x, -jnp.inf, lax.max, (1, 1, 2, 2), (1, 1, 2, 2),
                                 "VALID")

    x = jnp.maximum(pool(conv(x_nchw, w1, params["conv1_b"])), 0.0)
    x = jnp.maximum(pool(conv(x, w2, params["conv2_b"])), 0.0)
    x = x.reshape(x.shape[0], -1)                          # torch NCHW flatten
    x = jnp.maximum(x @ params["fc1_w"] + params["fc1_b"], 0.0)
    return x @ params["fc2_w"] + params["fc2_b"]


if __name__ == "__main__":
    input_shape = (16, 16)
    in_channels = 4
    conv1_width = 8
    conv2_width = 8
    fc1_width = 32
    class_count = 10
    batch = 8
    b_blk = 4     # M ~ b_blk*(H+4): raise to ~8 on v5e / ~12-16 on v6e,v7x (keep even)

    key = jax.random.PRNGKey(0)
    pkey, xkey = jax.random.split(key)
    params = init_params(pkey, input_shape, in_channels, conv1_width,
                         conv2_width, fc1_width, class_count)
    kparams = prepare_kernel_params(params, input_shape)
    x = jax.random.normal(xkey, (batch, in_channels) + input_shape, jnp.float32)

    logits = forward(kparams, x, class_count=class_count, b_blk=b_blk)
    jax.block_until_ready(logits)

    assert logits.shape == (batch, class_count)
    ref = reference_forward(params, x)
    np.testing.assert_allclose(np.asarray(logits), np.asarray(ref),
                               atol=1e-3, rtol=1e-3)
    print("KERNEL_OK")
</pallas_src>

<mosaic_0001>
module attributes {stable_mosaic.version = 11 : i64} {
  func.func @fused_cnn_kernel(%arg0: i32, %arg1: memref<1x80x64xf32, #tpu.memory_space<vmem>>, %arg2: memref<5x64x128xf32, #tpu.memory_space<vmem>>, %arg3: memref<1x128xf32, #tpu.memory_space<vmem>>, %arg4: memref<128x128xf32, #tpu.memory_space<vmem>>, %arg5: memref<5x64x64xf32, #tpu.memory_space<vmem>>, %arg6: memref<1x64xf32, #tpu.memory_space<vmem>>, %arg7: memref<64x64xf32, #tpu.memory_space<vmem>>, %arg8: memref<128x32xf32, #tpu.memory_space<vmem>>, %arg9: memref<1x32xf32, #tpu.memory_space<vmem>>, %arg10: memref<32x128xf32, #tpu.memory_space<vmem>>, %arg11: memref<1x128xf32, #tpu.memory_space<vmem>>, %arg12: memref<1x4x128xf32, #tpu.memory_space<vmem>>, %arg13: memref<48x64xf32, #tpu.memory_space<vmem>>, %arg14: memref<76x128xf32, #tpu.memory_space<vmem>>, %arg15: memref<44x64xf32, #tpu.memory_space<vmem>>, %arg16: memref<22x32xf32, #tpu.memory_space<vmem>>, %arg17: memref<4x128xf32, #tpu.memory_space<vmem>>) attributes {dimension_semantics = [#tpu.dimension_semantics<parallel>], iteration_bounds = array<i64: 2>, scalar_prefetch = 0 : i64, scratch_operands = 5 : i64, tpu.core_type = #tpu.core_type<tc>, window_params = [{transform_indices = @transform_0, window_bounds = array<i64: 1, 80, 64>}, {pipeline_mode = #tpu.pipeline_mode<synchronous>, transform_indices = @transform_1, window_bounds = array<i64: 5, 64, 128>}, {pipeline_mode = #tpu.pipeline_mode<synchronous>, transform_indices = @transform_2, window_bounds = array<i64: 1, 128>}, {pipeline_mode = #tpu.pipeline_mode<synchronous>, transform_indices = @transform_3, window_bounds = array<i64: 128, 128>}, {pipeline_mode = #tpu.pipeline_mode<synchronous>, transform_indices = @transform_4, window_bounds = array<i64: 5, 64, 64>}, {pipeline_mode = #tpu.pipeline_mode<synchronous>, transform_indices = @transform_5, window_bounds = array<i64: 1, 64>}, {pipeline_mode = #tpu.pipeline_mode<synchronous>, transform_indices = @transform_6, window_bounds = array<i64: 64, 64>}, {pipeline_mode = #tpu.pipeline_mode<synchronous>, transform_indices = @transform_7, window_bounds = array<i64: 128, 32>}, {pipeline_mode = #tpu.pipeline_mode<synchronous>, transform_indices = @transform_8, window_bounds = array<i64: 1, 32>}, {pipeline_mode = #tpu.pipeline_mode<synchronous>, transform_indices = @transform_9, window_bounds = array<i64: 32, 128>}, {pipeline_mode = #tpu.pipeline_mode<synchronous>, transform_indices = @transform_10, window_bounds = array<i64: 1, 128>}, {transform_indices = @transform_11, window_bounds = array<i64: 1, 4, 128>}]} {
    %cst = arith.constant 0.000000e+00 : f32
    %0 = vector.broadcast %cst : f32 to vector<76x128xf32>
    %c0 = arith.constant 0 : index
    %c0_0 = arith.constant 0 : index
    %c0_1 = arith.constant 0 : index
    %1 = vector.load %arg1[%c0, %c0_0, %c0_1] : memref<1x80x64xf32, #tpu.memory_space<vmem>>, vector<1x76x64xf32>
    %2 = vector.shape_cast %1 : vector<1x76x64xf32> to vector<76x64xf32>
    %c0_2 = arith.constant 0 : index
    %c0_3 = arith.constant 0 : index
    %c0_4 = arith.constant 0 : index
    %3 = vector.load %arg2[%c0_2, %c0_3, %c0_4] : memref<5x64x128xf32, #tpu.memory_space<vmem>>, vector<1x64x128xf32>
    %4 = vector.shape_cast %3 : vector<1x64x128xf32> to vector<64x128xf32>
    %cst_5 = arith.constant dense<0.000000e+00> : vector<76x128xf32>
    %5 = tpu.matmul %2, %4, %cst_5 {dimension_numbers = #tpu.dot_dimension_numbers<[1], [0], [0], [1], [0, 0, 1, 1], [], []>} : vector<76x64xf32>, vector<64x128xf32>, vector<76x128xf32> -> vector<76x128xf32>
    %6 = arith.addf %0, %5 : vector<76x128xf32>
    %c0_6 = arith.constant 0 : index
    %c1 = arith.constant 1 : index
    %c0_7 = arith.constant 0 : index
    %7 = vector.load %arg1[%c0_6, %c1, %c0_7] : memref<1x80x64xf32, #tpu.memory_space<vmem>>, vector<1x76x64xf32>
    %8 = vector.shape_cast %7 : vector<1x76x64xf32> to vector<76x64xf32>
    %c1_8 = arith.constant 1 : index
    %c0_9 = arith.constant 0 : index
    %c0_10 = arith.constant 0 : index
    %9 = vector.load %arg2[%c1_8, %c0_9, %c0_10] : memref<5x64x128xf32, #tpu.memory_space<vmem>>, vector<1x64x128xf32>
    %10 = vector.shape_cast %9 : vector<1x64x128xf32> to vector<64x128xf32>
    %cst_11 = arith.constant dense<0.000000e+00> : vector<76x128xf32>
    %11 = tpu.matmul %8, %10, %cst_11 {dimension_numbers = #tpu.dot_dimension_numbers<[1], [0], [0], [1], [0, 0, 1, 1], [], []>} : vector<76x64xf32>, vector<64x128xf32>, vector<76x128xf32> -> vector<76x128xf32>
    %12 = arith.addf %6, %11 : vector<76x128xf32>
    %c0_12 = arith.constant 0 : index
    %c2 = arith.constant 2 : index
    %c0_13 = arith.constant 0 : index
    %13 = vector.load %arg1[%c0_12, %c2, %c0_13] : memref<1x80x64xf32, #tpu.memory_space<vmem>>, vector<1x76x64xf32>
    %14 = vector.shape_cast %13 : vector<1x76x64xf32> to vector<76x64xf32>
    %c2_14 = arith.constant 2 : index
    %c0_15 = arith.constant 0 : index
    %c0_16 = arith.constant 0 : index
    %15 = vector.load %arg2[%c2_14, %c0_15, %c0_16] : memref<5x64x128xf32, #tpu.memory_space<vmem>>, vector<1x64x128xf32>
    %16 = vector.shape_cast %15 : vector<1x64x128xf32> to vector<64x128xf32>
    %cst_17 = arith.constant dense<0.000000e+00> : vector<76x128xf32>
    %17 = tpu.matmul %14, %16, %cst_17 {dimension_numbers = #tpu.dot_dimension_numbers<[1], [0], [0], [1], [0, 0, 1, 1], [], []>} : vector<76x64xf32>, vector<64x128xf32>, vector<76x128xf32> -> vector<76x128xf32>
    %18 = arith.addf %12, %17 : vector<76x128xf32>
    %c0_18 = arith.constant 0 : index
    %c3 = arith.constant 3 : index
    %c0_19 = arith.constant 0 : index
    %19 = vector.load %arg1[%c0_18, %c3, %c0_19] : memref<1x80x64xf32, #tpu.memory_space<vmem>>, vector<1x76x64xf32>
    %20 = vector.shape_cast %19 : vector<1x76x64xf32> to vector<76x64xf32>
    %c3_20 = arith.constant 3 : index
    %c0_21 = arith.constant 0 : index
    %c0_22 = arith.constant 0 : index
    %21 = vector.load %arg2[%c3_20, %c0_21, %c0_22] : memref<5x64x128xf32, #tpu.memory_space<vmem>>, vector<1x64x128xf32>
    %22 = vector.shape_cast %21 : vector<1x64x128xf32> to vector<64x128xf32>
    %cst_23 = arith.constant dense<0.000000e+00> : vector<76x128xf32>
    %23 = tpu.matmul %20, %22, %cst_23 {dimension_numbers = #tpu.dot_dimension_numbers<[1], [0], [0], [1], [0, 0, 1, 1], [], []>} : vector<76x64xf32>, vector<64x128xf32>, vector<76x128xf32> -> vector<76x128xf32>
    %24 = arith.addf %18, %23 : vector<76x128xf32>
    %c0_24 = arith.constant 0 : index
    %c4 = arith.constant 4 : index
    %c0_25 = arith.constant 0 : index
    %25 = vector.load %arg1[%c0_24, %c4, %c0_25] : memref<1x80x64xf32, #tpu.memory_space<vmem>>, vector<1x76x64xf32>
    %26 = vector.shape_cast %25 : vector<1x76x64xf32> to vector<76x64xf32>
    %c4_26 = arith.constant 4 : index
    %c0_27 = arith.constant 0 : index
    %c0_28 = arith.constant 0 : index
    %27 = vector.load %arg2[%c4_26, %c0_27, %c0_28] : memref<5x64x128xf32, #tpu.memory_space<vmem>>, vector<1x64x128xf32>
    %28 = vector.shape_cast %27 : vector<1x64x128xf32> to vector<64x128xf32>
    %cst_29 = arith.constant dense<0.000000e+00> : vector<76x128xf32>
    %29 = tpu.matmul %26, %28, %cst_29 {dimension_numbers = #tpu.dot_dimension_numbers<[1], [0], [0], [1], [0, 0, 1, 1], [], []>} : vector<76x64xf32>, vector<64x128xf32>, vector<76x128xf32> -> vector<76x128xf32>
    %30 = arith.addf %24, %29 : vector<76x128xf32>
    %c0_30 = arith.constant 0 : index
    %c0_31 = arith.constant 0 : index
    %31 = vector.load %arg14[%c0_30, %c0_31] : memref<76x128xf32, #tpu.memory_space<vmem>>, vector<76x128xf32>
    tpu.vector_store %arg14[%c0_30, %c0_31], %30 {strides = array<i32>} : memref<76x128xf32, #tpu.memory_space<vmem>>, vector<76x128xf32>,
    %c0_32 = arith.constant 0 : index
    %c0_33 = arith.constant 0 : index
    %32 = tpu.strided_load %arg14[%c0_32, %c0_33] {strides = array<i32: 2, 1>} : memref<76x128xf32, #tpu.memory_space<vmem>>, vector<38x128xf32>
    %c1_34 = arith.constant 1 : index
    %c0_35 = arith.constant 0 : index
    %33 = tpu.strided_load %arg14[%c1_34, %c0_35] {strides = array<i32: 2, 1>} : memref<76x128xf32, #tpu.memory_space<vmem>>, vector<38x128xf32>
    %34 = arith.maximumf %32, %33 : vector<38x128xf32>
    %c0_36 = arith.constant 0 : index
    %c0_37 = arith.constant 0 : index
    %35 = vector.load %arg3[%c0_36, %c0_37] : memref<1x128xf32, #tpu.memory_space<vmem>>, vector<1x128xf32>
    %36 = vector.broadcast %35 : vector<1x128xf32> to vector<38x128xf32>
    %37 = arith.addf %34, %36 : vector<38x128xf32>
    %c0_38 = arith.constant 0 : index
    %c0_39 = arith.constant 0 : index
    %38 = vector.load %arg4[%c0_38, %c0_39] : memref<128x128xf32, #tpu.memory_space<vmem>>, vector<128x128xf32>
    %cst_40 = arith.constant dense<0.000000e+00> : vector<38x128xf32>
    %39 = tpu.matmul %37, %38, %cst_40 {dimension_numbers = #tpu.dot_dimension_numbers<[1], [0], [0], [1], [0, 0, 1, 1], [], []>} : vector<38x128xf32>, vector<128x128xf32>, vector<38x128xf32> -> vector<38x128xf32>
    %40 = vector.extract_strided_slice %39 {offsets = [0, 0], sizes = [38, 64], strides = [1, 1]} : vector<38x128xf32> to vector<38x64xf32>
    %41 = vector.extract_strided_slice %39 {offsets = [0, 64], sizes = [38, 64], strides = [1, 1]} : vector<38x128xf32> to vector<38x64xf32>
    %42 = arith.maximumf %40, %41 : vector<38x64xf32>
    %cst_41 = arith.constant 0.000000e+00 : f32
    %43 = vector.broadcast %cst_41 : f32 to vector<38x64xf32>
    %44 = arith.maximumf %42, %43 : vector<38x64xf32>
    %cst_42 = arith.constant 0.000000e+00 : f32
    %45 = vector.broadcast %cst_42 : f32 to vector<2x64xf32>
    %c0_43 = arith.constant 0 : index
    %c0_44 = arith.constant 0 : index
    %46 = vector.load %arg13[%c0_43, %c0_44] : memref<48x64xf32, #tpu.memory_space<vmem>>, vector<2x64xf32>
    tpu.vector_store %arg13[%c0_43, %c0_44], %45 {strides = array<i32>} : memref<48x64xf32, #tpu.memory_space<vmem>>, vector<2x64xf32>,
    %47 = vector.extract_strided_slice %44 {offsets = [0, 0], sizes = [8, 64], strides = [1, 1]} : vector<38x64xf32> to vector<8x64xf32>
    %c2_45 = arith.constant 2 : index
    %c0_46 = arith.constant 0 : index
    %48 = vector.load %arg13[%c2_45, %c0_46] : memref<48x64xf32, #tpu.memory_space<vmem>>, vector<8x64xf32>
    tpu.vector_store %arg13[%c2_45, %c0_46], %47 {strides = array<i32>} : memref<48x64xf32, #tpu.memory_space<vmem>>, vector<8x64xf32>,
    %c10 = arith.constant 10 : index
    %c0_47 = arith.constant 0 : index
    %49 = vector.load %arg13[%c10, %c0_47] : memref<48x64xf32, #tpu.memory_space<vmem>>, vector<2x64xf32>
    tpu.vector_store %arg13[%c10, %c0_47], %45 {strides = array<i32>} : memref<48x64xf32, #tpu.memory_space<vmem>>, vector<2x64xf32>,
    %c12 = arith.constant 12 : index
    %c0_48 = arith.constant 0 : index
    %50 = vector.load %arg13[%c12, %c0_48] : memref<48x64xf32, #tpu.memory_space<vmem>>, vector<2x64xf32>
    tpu.vector_store %arg13[%c12, %c0_48], %45 {strides = array<i32>} : memref<48x64xf32, #tpu.memory_space<vmem>>, vector<2x64xf32>,
    %51 = vector.extract_strided_slice %44 {offsets = [10, 0], sizes = [8, 64], strides = [1, 1]} : vector<38x64xf32> to vector<8x64xf32>
    %c14 = arith.constant 14 : index
    %c0_49 = arith.constant 0 : index
    %52 = vector.load %arg13[%c14, %c0_49] : memref<48x64xf32, #tpu.memory_space<vmem>>, vector<8x64xf32>
    tpu.vector_store %arg13[%c14, %c0_49], %51 {strides = array<i32>} : memref<48x64xf32, #tpu.memory_space<vmem>>, vector<8x64xf32>,
    %c22 = arith.constant 22 : index
    %c0_50 = arith.constant 0 : index
    %53 = vector.load %arg13[%c22, %c0_50] : memref<48x64xf32, #tpu.memory_space<vmem>>, vector<2x64xf32>
    tpu.vector_store %arg13[%c22, %c0_50], %45 {strides = array<i32>} : memref<48x64xf32, #tpu.memory_space<vmem>>, vector<2x64xf32>,
    %c24 = arith.constant 24 : index
    %c0_51 = arith.constant 0 : index
    %54 = vector.load %arg13[%c24, %c0_51] : memref<48x64xf32, #tpu.memory_space<vmem>>, vector<2x64xf32>
    tpu.vector_store %arg13[%c24, %c0_51], %45 {strides = array<i32>} : memref<48x64xf32, #tpu.memory_space<vmem>>, vector<2x64xf32>,
    %55 = vector.extract_strided_slice %44 {offsets = [20, 0], sizes = [8, 64], strides = [1, 1]} : vector<38x64xf32> to vector<8x64xf32>
    %c26 = arith.constant 26 : index
    %c0_52 = arith.constant 0 : index
    %56 = vector.load %arg13[%c26, %c0_52] : memref<48x64xf32, #tpu.memory_space<vmem>>, vector<8x64xf32>
    tpu.vector_store %arg13[%c26, %c0_52], %55 {strides = array<i32>} : memref<48x64xf32, #tpu.memory_space<vmem>>, vector<8x64xf32>,
    %c34 = arith.constant 34 : index
    %c0_53 = arith.constant 0 : index
    %57 = vector.load %arg13[%c34, %c0_53] : memref<48x64xf32, #tpu.memory_space<vmem>>, vector<2x64xf32>
    tpu.vector_store %arg13[%c34, %c0_53], %45 {strides = array<i32>} : memref<48x64xf32, #tpu.memory_space<vmem>>, vector<2x64xf32>,
    %c36 = arith.constant 36 : index
    %c0_54 = arith.constant 0 : index
    %58 = vector.load %arg13[%c36, %c0_54] : memref<48x64xf32, #tpu.memory_space<vmem>>, vector<2x64xf32>
    tpu.vector_store %arg13[%c36, %c0_54], %45 {strides = array<i32>} : memref<48x64xf32, #tpu.memory_space<vmem>>, vector<2x64xf32>,
    %59 = vector.extract_strided_slice %44 {offsets = [30, 0], sizes = [8, 64], strides = [1, 1]} : vector<38x64xf32> to vector<8x64xf32>
    %c38 = arith.constant 38 : index
    %c0_55 = arith.constant 0 : index
    %60 = vector.load %arg13[%c38, %c0_55] : memref<48x64xf32, #tpu.memory_space<vmem>>, vector<8x64xf32>
    tpu.vector_store %arg13[%c38, %c0_55], %59 {strides = array<i32>} : memref<48x64xf32, #tpu.memory_space<vmem>>, vector<8x64xf32>,
    %c46 = arith.constant 46 : index
    %c0_56 = arith.constant 0 : index
    %61 = vector.load %arg13[%c46, %c0_56] : memref<48x64xf32, #tpu.memory_space<vmem>>, vector<2x64xf32>
    tpu.vector_store %arg13[%c46, %c0_56], %45 {strides = array<i32>} : memref<48x64xf32, #tpu.memory_space<vmem>>, vector<2x64xf32>,
    %cst_57 = arith.constant 0.000000e+00 : f32
    %62 = vector.broadcast %cst_57 : f32 to vector<44x64xf32>
    %c0_58 = arith.constant 0 : index
    %c0_59 = arith.constant 0 : index
    %63 = vector.load %arg13[%c0_58, %c0_59] : memref<48x64xf32, #tpu.memory_space<vmem>>, vector<44x64xf32>
    %c0_60 = arith.constant 0 : index
    %c0_61 = arith.constant 0 : index
    %c0_62 = arith.constant 0 : index
    %64 = vector.load %arg5[%c0_60, %c0_61, %c0_62] : memref<5x64x64xf32, #tpu.memory_space<vmem>>, vector<1x64x64xf32>
    %65 = vector.shape_cast %64 : vector<1x64x64xf32> to vector<64x64xf32>
    %cst_63 = arith.constant dense<0.000000e+00> : vector<44x64xf32>
    %66 = tpu.matmul %63, %65, %cst_63 {dimension_numbers = #tpu.dot_dimension_numbers<[1], [0], [0], [1], [0, 0, 1, 1], [], []>} : vector<44x64xf32>, vector<64x64xf32>, vector<44x64xf32> -> vector<44x64xf32>
    %67 = arith.addf %62, %66 : vector<44x64xf32>
    %c1_64 = arith.constant 1 : index
    %c0_65 = arith.constant 0 : index
    %68 = vector.load %arg13[%c1_64, %c0_65] : memref<48x64xf32, #tpu.memory_space<vmem>>, vector<44x64xf32>
    %c1_66 = arith.constant 1 : index
    %c0_67 = arith.constant 0 : index
    %c0_68 = arith.constant 0 : index
    %69 = vector.load %arg5[%c1_66, %c0_67, %c0_68] : memref<5x64x64xf32, #tpu.memory_space<vmem>>, vector<1x64x64xf32>
    %70 = vector.shape_cast %69 : vector<1x64x64xf32> to vector<64x64xf32>
    %cst_69 = arith.constant dense<0.000000e+00> : vector<44x64xf32>
    %71 = tpu.matmul %68, %70, %cst_69 {dimension_numbers = #tpu.dot_dimension_numbers<[1], [0], [0], [1], [0, 0, 1, 1], [], []>} : vector<44x64xf32>, vector<64x64xf32>, vector<44x64xf32> -> vector<44x64xf32>
    %72 = arith.addf %67, %71 : vector<44x64xf32>
    %c2_70 = arith.constant 2 : index
    %c0_71 = arith.constant 0 : index
    %73 = vector.load %arg13[%c2_70, %c0_71] : memref<48x64xf32, #tpu.memory_space<vmem>>, vector<44x64xf32>
    %c2_72 = arith.constant 2 : index
    %c0_73 = arith.constant 0 : index
    %c0_74 = arith.constant 0 : index
    %74 = vector.load %arg5[%c2_72, %c0_73, %c0_74] : memref<5x64x64xf32, #tpu.memory_space<vmem>>, vector<1x64x64xf32>
    %75 = vector.shape_cast %74 : vector<1x64x64xf32> to vector<64x64xf32>
    %cst_75 = arith.constant dense<0.000000e+00> : vector<44x64xf32>
    %76 = tpu.matmul %73, %75, %cst_75 {dimension_numbers = #tpu.dot_dimension_numbers<[1], [0], [0], [1], [0, 0, 1, 1], [], []>} : vector<44x64xf32>, vector<64x64xf32>, vector<44x64xf32> -> vector<44x64xf32>
    %77 = arith.addf %72, %76 : vector<44x64xf32>
    %c3_76 = arith.constant 3 : index
    %c0_77 = arith.constant 0 : index
    %78 = vector.load %arg13[%c3_76, %c0_77] : memref<48x64xf32, #tpu.memory_space<vmem>>, vector<44x64xf32>
    %c3_78 = arith.constant 3 : index
    %c0_79 = arith.constant 0 : index
    %c0_80 = arith.constant 0 : index
    %79 = vector.load %arg5[%c3_78, %c0_79, %c0_80] : memref<5x64x64xf32, #tpu.memory_space<vmem>>, vector<1x64x64xf32>
    %80 = vector.shape_cast %79 : vector<1x64x64xf32> to vector<64x64xf32>
    %cst_81 = arith.constant dense<0.000000e+00> : vector<44x64xf32>
    %81 = tpu.matmul %78, %80, %cst_81 {dimension_numbers = #tpu.dot_dimension_numbers<[1], [0], [0], [1], [0, 0, 1, 1], [], []>} : vector<44x64xf32>, vector<64x64xf32>, vector<44x64xf32> -> vector<44x64xf32>
    %82 = arith.addf %77, %81 : vector<44x64xf32>
    %c4_82 = arith.constant 4 : index
    %c0_83 = arith.constant 0 : index
    %83 = vector.load %arg13[%c4_82, %c0_83] : memref<48x64xf32, #tpu.memory_space<vmem>>, vector<44x64xf32>
    %c4_84 = arith.constant 4 : index
    %c0_85 = arith.constant 0 : index
    %c0_86 = arith.constant 0 : index
    %84 = vector.load %arg5[%c4_84, %c0_85, %c0_86] : memref<5x64x64xf32, #tpu.memory_space<vmem>>, vector<1x64x64xf32>
    %85 = vector.shape_cast %84 : vector<1x64x64xf32> to vector<64x64xf32>
    %cst_87 = arith.constant dense<0.000000e+00> : vector<44x64xf32>
    %86 = tpu.matmul %83, %85, %cst_87 {dimension_numbers = #tpu.dot_dimension_numbers<[1], [0], [0], [1], [0, 0, 1, 1], [], []>} : vector<44x64xf32>, vector<64x64xf32>, vector<44x64xf32> -> vector<44x64xf32>
    %87 = arith.addf %82, %86 : vector<44x64xf32>
    %c0_88 = arith.constant 0 : index
    %c0_89 = arith.constant 0 : index
    %88 = vector.load %arg15[%c0_88, %c0_89] : memref<44x64xf32, #tpu.memory_space<vmem>>, vector<44x64xf32>
    tpu.vector_store %arg15[%c0_88, %c0_89], %87 {strides = array<i32>} : memref<44x64xf32, #tpu.memory_space<vmem>>, vector<44x64xf32>,
    %c0_90 = arith.constant 0 : index
    %c0_91 = arith.constant 0 : index
    %89 = tpu.strided_load %arg15[%c0_90, %c0_91] {strides = array<i32: 2, 1>} : memref<44x64xf32, #tpu.memory_space<vmem>>, vector<22x64xf32>
    %c1_92 = arith.constant 1 : index
    %c0_93 = arith.constant 0 : index
    %90 = tpu.strided_load %arg15[%c1_92, %c0_93] {strides = array<i32: 2, 1>} : memref<44x64xf32, #tpu.memory_space<vmem>>, vector<22x64xf32>
    %91 = arith.maximumf %89, %90 : vector<22x64xf32>
    %c0_94 = arith.constant 0 : index
    %c0_95 = arith.constant 0 : index
    %92 = vector.load %arg6[%c0_94, %c0_95] : memref<1x64xf32, #tpu.memory_space<vmem>>, vector<1x64xf32>
    %93 = vector.broadcast %92 : vector<1x64xf32> to vector<22x64xf32>
    %94 = arith.addf %91, %93 : vector<22x64xf32>
    %c0_96 = arith.constant 0 : index
    %c0_97 = arith.constant 0 : index
    %95 = vector.load %arg7[%c0_96, %c0_97] : memref<64x64xf32, #tpu.memory_space<vmem>>, vector<64x64xf32>
    %cst_98 = arith.constant dense<0.000000e+00> : vector<22x64xf32>
    %96 = tpu.matmul %94, %95, %cst_98 {dimension_numbers = #tpu.dot_dimension_numbers<[1], [0], [0], [1], [0, 0, 1, 1], [], []>} : vector<22x64xf32>, vector<64x64xf32>, vector<22x64xf32> -> vector<22x64xf32>
    %97 = vector.extract_strided_slice %96 {offsets = [0, 0], sizes = [22, 32], strides = [1, 1]} : vector<22x64xf32> to vector<22x32xf32>
    %98 = vector.extract_strided_slice %96 {offsets = [0, 32], sizes = [22, 32], strides = [1, 1]} : vector<22x64xf32> to vector<22x32xf32>
    %99 = arith.maximumf %97, %98 : vector<22x32xf32>
    %cst_99 = arith.constant 0.000000e+00 : f32
    %100 = vector.broadcast %cst_99 : f32 to vector<22x32xf32>
    %101 = arith.maximumf %99, %100 : vector<22x32xf32>
    %c0_100 = arith.constant 0 : index
    %c0_101 = arith.constant 0 : index
    %102 = vector.load %arg16[%c0_100, %c0_101] : memref<22x32xf32, #tpu.memory_space<vmem>>, vector<22x32xf32>
    tpu.vector_store %arg16[%c0_100, %c0_101], %101 {strides = array<i32>} : memref<22x32xf32, #tpu.memory_space<vmem>>, vector<22x32xf32>,
    %c0_102 = arith.constant 0 : index
    %c0_103 = arith.constant 0 : index
    %103 = tpu.strided_load %arg16[%c0_102, %c0_103] {strides = array<i32: 6, 1>} : memref<22x32xf32, #tpu.memory_space<vmem>>, vector<4x32xf32>
    %c0_104 = arith.constant 0 : index
    %c0_105 = arith.constant 0 : index
    %104 = vector.load %arg17[%c0_104, %c0_105] : memref<4x128xf32, #tpu.memory_space<vmem>>, vector<4x32xf32>
    tpu.vector_store %arg17[%c0_104, %c0_105], %103 {strides = array<i32>} : memref<4x128xf32, #tpu.memory_space<vmem>>, vector<4x32xf32>,
    %c1_106 = arith.constant 1 : index
    %c0_107 = arith.constant 0 : index
    %105 = tpu.strided_load %arg16[%c1_106, %c0_107] {strides = array<i32: 6, 1>} : memref<22x32xf32, #tpu.memory_space<vmem>>, vector<4x32xf32>
    %c0_108 = arith.constant 0 : index
    %c32 = arith.constant 32 : index
    %106 = vector.load %arg17[%c0_108, %c32] : memref<4x128xf32, #tpu.memory_space<vmem>>, vector<4x32xf32>
    tpu.vector_store %arg17[%c0_108, %c32], %105 {strides = array<i32>} : memref<4x128xf32, #tpu.memory_space<vmem>>, vector<4x32xf32>,
    %c2_109 = arith.constant 2 : index
    %c0_110 = arith.constant 0 : index
    %107 = tpu.strided_load %arg16[%c2_109, %c0_110] {strides = array<i32: 6, 1>} : memref<22x32xf32, #tpu.memory_space<vmem>>, vector<4x32xf32>
    %c0_111 = arith.constant 0 : index
    %c64 = arith.constant 64 : index
    %108 = vector.load %arg17[%c0_111, %c64] : memref<4x128xf32, #tpu.memory_space<vmem>>, vector<4x32xf32>
    tpu.vector_store %arg17[%c0_111, %c64], %107 {strides = array<i32>} : memref<4x128xf32, #tpu.memory_space<vmem>>, vector<4x32xf32>,
    %c3_112 = arith.constant 3 : index
    %c0_113 = arith.constant 0 : index
    %109 = tpu.strided_load %arg16[%c3_112, %c0_113] {strides = array<i32: 6, 1>} : memref<22x32xf32, #tpu.memory_space<vmem>>, vector<4x32xf32>
    %c0_114 = arith.constant 0 : index
    %c96 = arith.constant 96 : index
    %110 = vector.load %arg17[%c0_114, %c96] : memref<4x128xf32, #tpu.memory_space<vmem>>, vector<4x32xf32>
    tpu.vector_store %arg17[%c0_114, %c96], %109 {strides = array<i32>} : memref<4x128xf32, #tpu.memory_space<vmem>>, vector<4x32xf32>,
    %c0_115 = arith.constant 0 : index
    %c0_116 = arith.constant 0 : index
    %111 = vector.load %arg17[%c0_115, %c0_116] : memref<4x128xf32, #tpu.memory_space<vmem>>, vector<4x128xf32>
    %c0_117 = arith.constant 0 : index
    %c0_118 = arith.constant 0 : index
    %112 = vector.load %arg8[%c0_117, %c0_118] : memref<128x32xf32, #tpu.memory_space<vmem>>, vector<128x32xf32>
    %cst_119 = arith.constant dense<0.000000e+00> : vector<4x32xf32>
    %113 = tpu.matmul %111, %112, %cst_119 {dimension_numbers = #tpu.dot_dimension_numbers<[1], [0], [0], [1], [0, 0, 1, 1], [], []>} : vector<4x128xf32>, vector<128x32xf32>, vector<4x32xf32> -> vector<4x32xf32>
    %c0_120 = arith.constant 0 : index
    %c0_121 = arith.constant 0 : index
    %114 = vector.load %arg9[%c0_120, %c0_121] : memref<1x32xf32, #tpu.memory_space<vmem>>, vector<1x32xf32>
    %115 = vector.broadcast %114 : vector<1x32xf32> to vector<4x32xf32>
    %116 = arith.addf %113, %115 : vector<4x32xf32>
    %cst_122 = arith.constant 0.000000e+00 : f32
    %117 = vector.broadcast %cst_122 : f32 to vector<4x32xf32>
    %118 = arith.maximumf %116, %117 : vector<4x32xf32>
    %c0_123 = arith.constant 0 : index
    %c0_124 = arith.constant 0 : index
    %119 = vector.load %arg10[%c0_123, %c0_124] : memref<32x128xf32, #tpu.memory_space<vmem>>, vector<32x128xf32>
    %cst_125 = arith.constant dense<0.000000e+00> : vector<4x128xf32>
    %120 = tpu.matmul %118, %119, %cst_125 {dimension_numbers = #tpu.dot_dimension_numbers<[1], [0], [0], [1], [0, 0, 1, 1], [], []>} : vector<4x32xf32>, vector<32x128xf32>, vector<4x128xf32> -> vector<4x128xf32>
    %c0_126 = arith.constant 0 : index
    %c0_127 = arith.constant 0 : index
    %121 = vector.load %arg11[%c0_126, %c0_127] : memref<1x128xf32, #tpu.memory_space<vmem>>, vector<1x128xf32>
    %122 = vector.broadcast %121 : vector<1x128xf32> to vector<4x128xf32>
    %123 = arith.addf %120, %122 : vector<4x128xf32>
    %c0_128 = arith.constant 0 : index
    %c0_129 = arith.constant 0 : index
    %c0_130 = arith.constant 0 : index
    %124 = vector.load %arg12[%c0_128, %c0_129, %c0_130] : memref<1x4x128xf32, #tpu.memory_space<vmem>>, vector<1x4x128xf32>
    %125 = vector.shape_cast %124 : vector<1x4x128xf32> to vector<4x128xf32>
    %126 = vector.shape_cast %123 : vector<4x128xf32> to vector<1x4x128xf32>
    tpu.vector_store %arg12[%c0_128, %c0_129, %c0_130], %126 {strides = array<i32>} : memref<1x4x128xf32, #tpu.memory_space<vmem>>, vector<1x4x128xf32>,
    return
  }
  func.func @transform_0(%arg0: i32) -> (i32, i32, i32) {
    %c0_i32 = arith.constant 0 : i32
    %c0_i32_0 = arith.constant 0 : i32
    %c0_i32_1 = arith.constant 0 : i32
    return %arg0, %c0_i32, %c0_i32_0 : i32, i32, i32
  }
  func.func @transform_1(%arg0: i32) -> (i32, i32, i32) {
    %c0_i32 = arith.constant 0 : i32
    %c0_i32_0 = arith.constant 0 : i32
    %c0_i32_1 = arith.constant 0 : i32
    %c0_i32_2 = arith.constant 0 : i32
    return %c0_i32, %c0_i32_0, %c0_i32_1 : i32, i32, i32
  }
  func.func @transform_2(%arg0: i32) -> (i32, i32) {
    %c0_i32 = arith.constant 0 : i32
    %c0_i32_0 = arith.constant 0 : i32
    %c0_i32_1 = arith.constant 0 : i32
    return %c0_i32, %c0_i32_0 : i32, i32
  }
  func.func @transform_3(%arg0: i32) -> (i32, i32) {
    %c0_i32 = arith.constant 0 : i32
    %c0_i32_0 = arith.constant 0 : i32
    %c0_i32_1 = arith.constant 0 : i32
    return %c0_i32, %c0_i32_0 : i32, i32
  }
  func.func @transform_4(%arg0: i32) -> (i32, i32, i32) {
    %c0_i32 = arith.constant 0 : i32
    %c0_i32_0 = arith.constant 0 : i32
    %c0_i32_1 = arith.constant 0 : i32
    %c0_i32_2 = arith.constant 0 : i32
    return %c0_i32, %c0_i32_0, %c0_i32_1 : i32, i32, i32
  }
  func.func @transform_5(%arg0: i32) -> (i32, i32) {
    %c0_i32 = arith.constant 0 : i32
    %c0_i32_0 = arith.constant 0 : i32
    %c0_i32_1 = arith.constant 0 : i32
    return %c0_i32, %c0_i32_0 : i32, i32
  }
  func.func @transform_6(%arg0: i32) -> (i32, i32) {
    %c0_i32 = arith.constant 0 : i32
    %c0_i32_0 = arith.constant 0 : i32
    %c0_i32_1 = arith.constant 0 : i32
    return %c0_i32, %c0_i32_0 : i32, i32
  }
  func.func @transform_7(%arg0: i32) -> (i32, i32) {
    %c0_i32 = arith.constant 0 : i32
    %c0_i32_0 = arith.constant 0 : i32
    %c0_i32_1 = arith.constant 0 : i32
    return %c0_i32, %c0_i32_0 : i32, i32
  }
  func.func @transform_8(%arg0: i32) -> (i32, i32) {
    %c0_i32 = arith.constant 0 : i32
    %c0_i32_0 = arith.constant 0 : i32
    %c0_i32_1 = arith.constant 0 : i32
    return %c0_i32, %c0_i32_0 : i32, i32
  }
  func.func @transform_9(%arg0: i32) -> (i32, i32) {
    %c0_i32 = arith.constant 0 : i32
    %c0_i32_0 = arith.constant 0 : i32
    %c0_i32_1 = arith.constant 0 : i32
    return %c0_i32, %c0_i32_0 : i32, i32
  }
  func.func @transform_10(%arg0: i32) -> (i32, i32) {
    %c0_i32 = arith.constant 0 : i32
    %c0_i32_0 = arith.constant 0 : i32
    %c0_i32_1 = arith.constant 0 : i32
    return %c0_i32, %c0_i32_0 : i32, i32
  }
  func.func @transform_11(%arg0: i32) -> (i32, i32, i32) {
    %c0_i32 = arith.constant 0 : i32
    %c0_i32_0 = arith.constant 0 : i32
    %c0_i32_1 = arith.constant 0 : i32
    return %arg0, %c0_i32, %c0_i32_0 : i32, i32, i32
  }
}

</mosaic_0001>

<bundles_post_ra>
// kernel: forward.1
= control target key start
LH: loop header
LB: loop body
LE: loop exit
PB: predicated region body
PF: predicated region fallthrough
CT: control target
= control target key end

     0   :  { %s2687_s0 = inlined_call_operand.vmem [shape: f32[2,80,64], index: 0, kind: input, shape index: {}]   ;;  %s2688_s1 = inlined_call_operand.vmem [shape: f32[5,64,128], index: 1, kind: input, shape index: {}]   ;;  %s2689_s2 = inlined_call_operand.vmem [shape: f32[1,128], index: 2, kind: input, shape index: {}]   ;;  %s2690_s3 = inlined_call_operand.vmem [shape: f32[128,128], index: 3, kind: input, shape index: {}]   ;;  %s2691_s4 = inlined_call_operand.vmem [shape: f32[5,64,64], index: 4, kind: input, shape index: {}]   ;;  %s2692_s5 = inlined_call_operand.vmem [shape: f32[1,64], index: 5, kind: input, shape index: {}]   ;;  %s2693_s6 = inlined_call_operand.vmem [shape: f32[64,64], index: 6, kind: input, shape index: {}]   ;;  %s2694_s7 = inlined_call_operand.vmem [shape: f32[128,32], index: 7, kind: input, shape index: {}]   ;;  %s2695_s8 = inlined_call_operand.vmem [shape: f32[1,32], index: 8, kind: input, shape index: {}]   ;;  %s2696_s9 = inlined_call_operand.vmem [shape: f32[32,128], index: 9, kind: input, shape index: {}]   ;;  %s2697_s10 = inlined_call_operand.vmem [shape: f32[1,128], index: 10, kind: input, shape index: {}]   ;;  %s2698_s11 = inlined_call_operand.hbm [shape: f32[2,4,128], index: 11, kind: output, shape index: {}]  }
   0x1   :  { %2700 = sst [smem:[#allocation12_spill]] %s2687_s0 }
   0x2   :  { %16 = vsyncpa [#allocation8], 0 }
   0x3   :  { %18 = vsyncpa [#allocation8 + $0x1], 0  ;;  %s1997_s17 = smov 0   ;;  %s1999_s18 = smov 0  }
   0x4   :  { %s2001_s19 = smov 0   ;;  %s2003_s20 = smov 0  }
   0x5 LB: > { %2701 = sst [smem:[#allocation10_spill]] %s1927_s19  ;;  %s2018_s21 = sadd.s32 4294967295, %s1931_s20   ;;  %s1931_s20 = sphi %s2003_s20, %s2710_s20   ;;  %s1927_s19 = sphi %s2001_s19, %s2707_s19   ;;  %s1923_s18 = sphi %s1999_s18, %s2709_s18   ;;  %s1919_s17 = sphi %s1997_s17, %s2708_s17  }
   0x6   : > { %s1663_s22 = sadd.s32 4294967294, %s1931_s20   ;;  %s2022_s23 = sadd.s32 1, %s1931_s20  }
   0x7   : > { %s267_s24 = sadd.s32 1, %s1927_s19  ;;  %s264_s25 = ssub.s32 %s1931_s20, %s2022_s23 }
   0x8   : > { %p277_p0 = scmp.ne.s32.totalorder %s1927_s19, %s1923_s18  ;;  %p265_p1 = scmp.eq.s32.totalorder %s264_s25, 0 }
   0x9   : > { %p278_p2 = scmp.eq.s32.totalorder %s2018_s21, 1  ;;  %p283_p3 = scmp.ne.s32.totalorder %s1923_s18, %s1919_s17 }
   0xa   : > { %p284_p4 = scmp.eq.s32.totalorder %s1663_s22, 1  ;;  %p1666_p7 = scmp.ge.s32.totalorder %s1931_s20, 1 }
   0xb   : > { %s2033_s26 = scalar_select %p265_p1, %s1927_s19, %s267_s24  }
   0xc   : > { %p2035_p5 = por %p278_p2, %p277_p0  ;;  %p2039_p6 = por %p284_p4, %p283_p3 }
   0xd   : > { %2702 = sst [smem:[#allocation11_spill]] %s2033_s26  ;;  %p340_p8 = scmp.lt.s32.totalorder %s1931_s20, 3 }
   0xf   : > { %p341_p9 = pnand %p1666_p7, %p340_p8 }
  0x10   : > { %p380_p10 = scmp.lt.s32.totalorder (!%p341_p9), %s2018_s21, 1  ;;  %s2705_s0 = sld [smem:[#allocation12_spill]] (!%p341_p9) }
  0x11   : > { %344 = sbr.rel (%p341_p9) target bundleno = 1419 (0x58b), region = 64  ;;  %s1935_s24 = smov (!%p341_p9), 96  }
  0x12   : > { %s1936_s25 = smov (!%p341_p9), 32   ;;  %s377_s15 = sand.u32 (!%p341_p9), 1, %s1923_s18  }
  0x13   : > { %s1818_s16 = sshll.u32 (!%p341_p9), %s2018_s21, 2  ;;  %s1889_s29 = scalar_lea.hbm (!%p341_p9), %s2698_s11, 8 }
  0x14   : > { %s1599_s12 = scalar_lea.hbm (!%p341_p9), %s2698_s11, %s1818_s16 }
  0x16   : > { %v1676_v0 = vld [vmem:[%s2688_s1 + $0x78] sm:$0xff]  ;;  %v1675_v3 = vld [vmem:[%s2688_s1 + $0x70] sm:$0xff]  ;;  %v1674_v7 = vld [vmem:[%s2688_s1 + $0x68] sm:$0xff]  ;;  %s2082_s30 = scalar_select %p380_p10, %s2018_s21, 1  ;;  %vm422_vm0 = vcmask 523264   ;;  %vm1016_vm1 = vcmask 517120  }
  0x17   : > { %v402_v1 = vld [vmem:[%s2688_s1 + $0x38] sm:$0xff]  ;;  %461 = vmatpush.msra.mxu0 %v1676_v0  ;;  %v401_v4 = vld [vmem:[%s2688_s1 + $0x30] sm:$0xff]  ;;  %v400_v8 = vld [vmem:[%s2688_s1 + $0x28] sm:$0xff]  ;;  %vm1021_vm2 = vcmask 523266   ;;  %vm1026_vm3 = vcmask 523268   ;;  %vm1034_vm4 = vcmask 521216  }
  0x18   : > { %v1704_v2 = vld [vmem:[%s2688_s1 + $0xb8] sm:$0xff]  ;;  %538 = vmatpush.msra.mxu1 %v402_v1  ;;  %v1703_v5 = vld [vmem:[%s2688_s1 + $0xb0] sm:$0xff]  ;;  %v1702_v9 = vld [vmem:[%s2688_s1 + $0xa8] sm:$0xff]  ;;  %s1821_s22 = smul.u32 80, %s2082_s30  ;;  %vm1028_vm5 = vcmask 519168   ;;  %vm1032_vm6 = vcmask 523270  }
  0x19   : > { %634 = vmatpush.msra.mxu2 %v1704_v2  ;;  %v1722_v6 = vld [vmem:[%s2688_s1 + $0xf8] sm:$0xff]  ;;  %462 = vmatpush.msra.mxu0 %v1675_v3  ;;  %v1721_v10 = vld [vmem:[%s2688_s1 + $0xf0] sm:$0xff]  ;;  %v1673_v11 = vld [vmem:[%s2688_s1 + $0x60] sm:$0xff]  ;;  %vm1482_vm7 = vcmask 261120   ;;  %vm1485_vm8 = vcmask 259072   ;;  %vm1488_vm9 = vcmask 257024  }
  0x1a   : > { %539 = vmatpush.msra.mxu1 %v401_v4  ;;  %740 = vmatpush.msra.mxu3 %v1722_v6  ;;  %v399_v12 = vld [vmem:[%s2688_s1 + $0x20] sm:$0xff]  ;;  %v1720_v14 = vld [vmem:[%s2688_s1 + $0xe8] sm:$0xff]  ;;  %v1672_v15 = vld [vmem:[%s2688_s1 + $0x58] sm:$0xff]  ;;  %s2136_s19 = scalar_lea.vmem %s2705_s0, %s1821_s22  ;;  %vm1496_vm10 = vcmask 519424   ;;  %vm1504_vm11 = vcmask 781824   ;;  %vm1512_vm12 = vcmask 1044224  }
  0x1b   : > { %635 = vmatpush.msra.mxu2 %v1703_v5  ;;  %463 = vmatpush.msra.mxu0 %v1674_v7  ;;  %v1701_v13 = vld [vmem:[%s2688_s1 + $0xa0] sm:$0xff]  ;;  %v398_v16 = vld [vmem:[%s2688_s1 + $0x18] sm:$0xff]  ;;  %v1671_v19 = vld [vmem:[%s2688_s1 + $0x50] sm:$0xff]  ;;  %s1667_s30 = sshll.u32 %s377_s15, 2 }
  0x1c   : > { %540 = vmatpush.msra.mxu1 %v400_v8  ;;  %741 = vmatpush.msra.mxu3 %v1721_v10  ;;  %v1700_v17 = vld [vmem:[%s2688_s1 + $0x98] sm:$0xff]  ;;  %v1719_v18 = vld [vmem:[%s2688_s1 + $0xe0] sm:$0xff]  ;;  %v397_v20 = vld [vmem:[%s2688_s1 + $0x10] sm:$0xff]  ;;  %s379_s26 = scalar_lea.vmem [#allocation7], %s1667_s30 }
  0x1d   : > { %636 = vmatpush.msra.mxu2 %v1702_v9  ;;  %464 = vmatpush.msra.mxu0 %v1673_v11  ;;  %v1699_v21 = vld [vmem:[%s2688_s1 + $0x90] sm:$0xff]  ;;  %v1718_v22 = vld [vmem:[%s2688_s1 + $0xd8] sm:$0xff]  ;;  %v1670_v23 = vld [vmem:[%s2688_s1 + $0x48] sm:$0xff]  ;;  %s1601_s14 = sshll.u32 %s379_s26, 4  ;;  %s1602_s14 = int_to_ptr.vmem [resolvable:$true] %s1601_s14 }
  0x1e   : > { %541 = vmatpush.msra.mxu1 %v399_v12  ;;  %742 = vmatpush.msra.mxu3 %v1720_v14  ;;  %v396_v24 = vld [vmem:[%s2688_s1 + $0x8] sm:$0xff]  ;;  %v1717_v26 = vld [vmem:[%s2688_s1 + $0xd0] sm:$0xff]  ;;  %v1669_v27 = vld [vmem:[%s2688_s1 + $0x40] sm:$0xff] }
  0x1f   : > { %637 = vmatpush.msra.mxu2 %v1701_v13  ;;  %465 = vmatpush.msra.mxu0 %v1672_v15  ;;  %v1698_v25 = vld [vmem:[%s2688_s1 + $0x88] sm:$0xff]  ;;  %v395_v28 = vld [vmem:[%s2688_s1] sm:$0xff]  ;;  %v1740_v34 = vld [vmem:[%s2688_s1 + $0x138] sm:$0xff] }
  0x20   : > { %542 = vmatpush.msra.mxu1 %v398_v16  ;;  %743 = vmatpush.msra.mxu3 %v1719_v18  ;;  %v1697_v29 = vld [vmem:[%s2688_s1 + $0x80] sm:$0xff]  ;;  %v1716_v30 = vld [vmem:[%s2688_s1 + $0xc8] sm:$0xff]  ;;  %v1739_v37 = vld [vmem:[%s2688_s1 + $0x130] sm:$0xff] }
  0x21   : > { %638 = vmatpush.msra.mxu2 %v1700_v17  ;;  %466 = vmatpush.msra.mxu0 %v1671_v19  ;;  %v403_v31 = vld [vmem:[%s2136_s19 + $0x1] sm:$0xff]  ;;  %v404_v40 = vld [vmem:[%s2136_s19 + $0x9] sm:$0xff]  ;;  %v1736_v44 = vld [vmem:[%s2688_s1 + $0x118] sm:$0xff] }
  0x22   : > { %543 = vmatpush.msra.mxu1 %v397_v20  ;;  %744 = vmatpush.msra.mxu3 %v1718_v22  ;;  %v385_v32 = vld [vmem:[%s2136_s19] sm:$0xff]  ;;  %v1738_v38 = vld [vmem:[%s2688_s1 + $0x128] sm:$0xff]  ;;  %v405_v45 = vld [vmem:[%s2136_s19 + $0x11] sm:$0xff] }
  0x23   : > { %639 = vmatpush.msra.mxu2 %v1699_v21  ;;  %467 = vmatpush.msra.mxu0 %v1670_v23  ;;  %v577_v33 = vld [vmem:[%s2136_s19 + $0x2] sm:$0xff]  ;;  %v578_v42 = vld [vmem:[%s2136_s19 + $0xa] sm:$0xff]  ;;  %v579_v47 = vld [vmem:[%s2136_s19 + $0x12] sm:$0xff] }
  0x24   : > { %544 = vmatpush.msra.mxu1 %v396_v24  ;;  %745 = vmatpush.msra.mxu3 %v1717_v26  ;;  %v1715_v35 = vld [vmem:[%s2688_s1 + $0xc0] sm:$0xff]  ;;  %v386_v41 = vld [vmem:[%s2136_s19 + $0x8] sm:$0xff]  ;;  %v387_v46 = vld [vmem:[%s2136_s19 + $0x10] sm:$0xff] }
  0x25   : > { %640 = vmatpush.msra.mxu2 %v1698_v25  ;;  %468 = vmatpush.msra.mxu0 %v1669_v27  ;;  %v683_v36 = vld [vmem:[%s2136_s19 + $0x3] sm:$0xff]  ;;  %v684_v43 = vld [vmem:[%s2136_s19 + $0xb] sm:$0xff]  ;;  %v685_v48 = vld [vmem:[%s2136_s19 + $0x13] sm:$0xff] }
  0x26   : > { %545 = vmatpush.msra.mxu1 %v395_v28  ;;  %746 = vmatpush.msra.mxu3 %v1716_v30  ;;  %v1737_v39 = vld [vmem:[%s2688_s1 + $0x120] sm:$0xff]  ;;  %v1735_v49 = vld [vmem:[%s2688_s1 + $0x110] sm:$0xff]  ;;  %v388_v51 = vld [vmem:[%s2136_s19 + $0x18] sm:$0xff] }
  0x27   : > { %641 = vmatpush.msra.mxu2 %v1697_v29  ;;  %1677 = vmatmul.msk.f32.vlgmr.msra.gmra.mxu0 %vm422_vm0, %v403_v31  ;;  %v406_v50 = vld [vmem:[%s2136_s19 + $0x19] sm:$0xff]  ;;  %v1734_v54 = vld [vmem:[%s2688_s1 + $0x108] sm:$0xff]  ;;  %v409_v0 = vld [vmem:[%s2136_s19 + $0x31] sm:$0xff] }
  0x28   : > { %1687 = vmatmul.msk.f32.vlgmr.msra.gmra.mxu1 %vm422_vm0, %v385_v32  ;;  %1705 = vmatmul.msk.f32.vlgmr.msra.gmra.mxu2 %vm422_vm0, %v577_v33  ;;  %v580_v52 = vld [vmem:[%s2136_s19 + $0x1a] sm:$0xff]  ;;  %v581_v57 = vld [vmem:[%s2136_s19 + $0x22] sm:$0xff]  ;;  %v582_v62 = vld [vmem:[%s2136_s19 + $0x2a] sm:$0xff] }
  0x29   : > { %846 = vmatpush.msrb.mxu0 %v1740_v34  ;;  %747 = vmatpush.msra.mxu3 %v1715_v35  ;;  %v686_v53 = vld [vmem:[%s2136_s19 + $0x1b] sm:$0xff]  ;;  %v687_v58 = vld [vmem:[%s2136_s19 + $0x23] sm:$0xff]  ;;  %v688_v63 = vld [vmem:[%s2136_s19 + $0x2b] sm:$0xff] }
  0x2a   : > { %1723 = vmatmul.msk.f32.vlgmr.msra.gmra.mxu3 %vm422_vm0, %v683_v36  ;;  %v407_v55 = vld [vmem:[%s2136_s19 + $0x21] sm:$0xff]  ;;  %v408_v60 = vld [vmem:[%s2136_s19 + $0x29] sm:$0xff]  ;;  %v583_v2 = vld [vmem:[%s2136_s19 + $0x32] sm:$0xff] }
  0x2b   : > { %847 = vmatpush.msrb.mxu0 %v1739_v37  ;;  %v389_v56 = vld [vmem:[%s2136_s19 + $0x20] sm:$0xff]  ;;  %v390_v61 = vld [vmem:[%s2136_s19 + $0x28] sm:$0xff]  ;;  %v391_v1 = vld [vmem:[%s2136_s19 + $0x30] sm:$0xff] }
  0x2c   : > { %v1733_v59 = vld [vmem:[%s2688_s1 + $0x100] sm:$0xff]  ;;  %v689_v3 = vld [vmem:[%s2136_s19 + $0x33] sm:$0xff]  ;;  %v412_v12 = vld [vmem:[%s2136_s19 + $0x49] sm:$0xf] }
  0x2d   : > { %848 = vmatpush.msrb.mxu0 %v1738_v38  ;;  %v410_v4 = vld [vmem:[%s2136_s19 + $0x39] sm:$0xff]  ;;  %v411_v8 = vld [vmem:[%s2136_s19 + $0x41] sm:$0xff]  ;;  %v586_v14 = vld [vmem:[%s2136_s19 + $0x4a] sm:$0xf] }
  0x2e   : > { %v392_v5 = vld [vmem:[%s2136_s19 + $0x38] sm:$0xff]  ;;  %v393_v9 = vld [vmem:[%s2136_s19 + $0x40] sm:$0xff]  ;;  %v394_v13 = vld [vmem:[%s2136_s19 + $0x48] sm:$0xf] }
  0x2f   : > { %849 = vmatpush.msrb.mxu0 %v1737_v39  ;;  %v584_v6 = vld [vmem:[%s2136_s19 + $0x3a] sm:$0xff]  ;;  %v585_v10 = vld [vmem:[%s2136_s19 + $0x42] sm:$0xff]  ;;  %v692_v15 = vld [vmem:[%s2136_s19 + $0x4b] sm:$0xf] }
  0x30   : > { %1678 = vmatmul.msk.f32.gmra.mxu0 %vm422_vm0, %v404_v40  ;;  %1688 = vmatmul.msk.f32.gmra.mxu1 %vm422_vm0, %v386_v41  ;;  %v690_v7 = vld [vmem:[%s2136_s19 + $0x3b] sm:$0xff]  ;;  %v691_v11 = vld [vmem:[%s2136_s19 + $0x43] sm:$0xff]  ;;  %v790_v17 = vld [vmem:[%s2136_s19 + $0xc] sm:$0xff] }
  0x31   : > { %1706 = vmatmul.msk.f32.gmra.mxu2 %vm422_vm0, %v578_v42  ;;  %850 = vmatpush.msrb.mxu0 %v1736_v44  ;;  %v789_v16 = vld [vmem:[%s2136_s19 + $0x4] sm:$0xff]  ;;  %v791_v18 = vld [vmem:[%s2136_s19 + $0x14] sm:$0xff]  ;;  %v792_v19 = vld [vmem:[%s2136_s19 + $0x1c] sm:$0xff] }
  0x32   : > { %1724 = vmatmul.msk.f32.gmra.mxu3 %vm422_vm0, %v684_v43  ;;  %v793_v20 = vld [vmem:[%s2136_s19 + $0x24] sm:$0xff]  ;;  %v794_v21 = vld [vmem:[%s2136_s19 + $0x2c] sm:$0xff]  ;;  %v795_v23 = vld [vmem:[%s2136_s19 + $0x34] sm:$0xff] }
  0x33   : > { %851 = vmatpush.msrb.mxu0 %v1735_v49  ;;  %v796_v25 = vld [vmem:[%s2136_s19 + $0x3c] sm:$0xff]  ;;  %v797_v27 = vld [vmem:[%s2136_s19 + $0x44] sm:$0xff]  ;;  %v952_v29 = vld [vmem:[%s2690_s3 + $0x70] sm:$0xff] }
  0x34   : > { %v953_v28 = vld [vmem:[%s2690_s3 + $0x78] sm:$0xff]  ;;  %v798_v31 = vld [vmem:[%s2136_s19 + $0x4c] sm:$0xf]  ;;  %v950_v34 = vld [vmem:[%s2690_s3 + $0x60] sm:$0xff]  ;;  %s1933_s19 = smov 64  }
  0x35   : > { %852 = vmatpush.msrb.mxu0 %v1734_v54  ;;  %954 = vmatpush.msrb.mxu1 %v953_v28  ;;  %v951_v32 = vld [vmem:[%s2690_s3 + $0x68] sm:$0xff]  ;;  %v949_v35 = vld [vmem:[%s2690_s3 + $0x58] sm:$0xff]  ;;  %v948_v37 = vld [vmem:[%s2690_s3 + $0x50] sm:$0xff] }
  0x36   : > { %v947_v38 = vld [vmem:[%s2690_s3 + $0x48] sm:$0xff]  ;;  %v946_v40 = vld [vmem:[%s2690_s3 + $0x40] sm:$0xff]  ;;  %v945_v41 = vld [vmem:[%s2690_s3 + $0x38] sm:$0xff] }
  0x37   : > { %853 = vmatpush.msrb.mxu0 %v1733_v59  ;;  %955 = vmatpush.msrb.mxu1 %v952_v29  ;;  %v939_v54 = vld [vmem:[%s2690_s3 + $0x8] sm:$0xff] }
  0x38   : > { %1679 = vmatmul.msk.f32.gmra.mxu0 %vm422_vm0, %v405_v45  ;;  %1689 = vmatmul.msk.f32.gmra.mxu1 %vm422_vm0, %v387_v46  ;;  %v944_v46 = vld [vmem:[%s2690_s3 + $0x30] sm:$0xff] }
  0x39   : > { %1707 = vmatmul.msk.f32.gmra.mxu2 %vm422_vm0, %v579_v47  ;;  %956 = vmatpush.msrb.mxu1 %v951_v32  ;;  %v943_v47 = vld [vmem:[%s2690_s3 + $0x28] sm:$0xff] }
  0x3a   : > { %1725 = vmatmul.msk.f32.gmra.mxu3 %vm422_vm0, %v685_v48  ;;  %v942_v48 = vld [vmem:[%s2690_s3 + $0x20] sm:$0xff] }
  0x3b   : > { %957 = vmatpush.msrb.mxu1 %v950_v34 }
  0x3d   : > { %958 = vmatpush.msrb.mxu1 %v949_v35 }
  0x3f   : > { %959 = vmatpush.msrb.mxu1 %v948_v37 }
  0x40   : > { %1680 = vmatmul.msk.f32.gmra.mxu0 %vm422_vm0, %v406_v50  ;;  %1690 = vmatmul.msk.f32.gmra.mxu1 %vm422_vm0, %v388_v51 }
  0x41   : > { %1708 = vmatmul.msk.f32.gmra.mxu2 %vm422_vm0, %v580_v52  ;;  %960 = vmatpush.msrb.mxu1 %v947_v38  ;;  %v941_v52 = vld [vmem:[%s2690_s3 + $0x18] sm:$0xff] }
  0x42   : > { %1726 = vmatmul.msk.f32.gmra.mxu3 %vm422_vm0, %v686_v53  ;;  %v940_v53 = vld [vmem:[%s2690_s3 + $0x10] sm:$0xff] }
  0x43   : > { %961 = vmatpush.msrb.mxu1 %v946_v40 }
  0x45   : > { %962 = vmatpush.msrb.mxu1 %v945_v41 }
  0x47   : > { %963 = vmatpush.msrb.mxu1 %v944_v46 }
  0x48   : > { %1681 = vmatmul.msk.f32.gmra.mxu0 %vm422_vm0, %v407_v55  ;;  %1691 = vmatmul.msk.f32.gmra.mxu1 %vm422_vm0, %v389_v56  ;;  %v938_v56 = vld [vmem:[%s2690_s3] sm:$0xff] }
  0x49   : > { %1709 = vmatmul.msk.f32.gmra.mxu2 %vm422_vm0, %v581_v57  ;;  %964 = vmatpush.msrb.mxu1 %v943_v47 }
  0x4a   : > { %1727 = vmatmul.msk.f32.gmra.mxu3 %vm422_vm0, %v687_v58 }
  0x4b   : > { %965 = vmatpush.msrb.mxu1 %v942_v48 }
  0x4d   : > { %966 = vmatpush.msrb.mxu1 %v941_v52 }
  0x4f   : > { %967 = vmatpush.msrb.mxu1 %v940_v53 }
  0x50   : > { %1682 = vmatmul.msk.f32.gmra.mxu0 %vm422_vm0, %v408_v60  ;;  %1692 = vmatmul.msk.f32.gmra.mxu1 %vm422_vm0, %v390_v61 }
  0x51   : > { %1710 = vmatmul.msk.f32.gmra.mxu2 %vm422_vm0, %v582_v62  ;;  %968 = vmatpush.msrb.mxu1 %v939_v54 }
  0x52   : > { %1728 = vmatmul.msk.f32.gmra.mxu3 %vm422_vm0, %v688_v63 }
  0x53   : > { %969 = vmatpush.msrb.mxu1 %v938_v56 }
  0x58   : > { %1683 = vmatmul.msk.f32.gmra.mxu0 %vm422_vm0, %v409_v0  ;;  %1693 = vmatmul.msk.f32.gmra.mxu1 %vm422_vm0, %v391_v1 }
  0x59   : > { %1711 = vmatmul.msk.f32.gmra.mxu2 %vm422_vm0, %v583_v2 }
  0x5a   : > { %1729 = vmatmul.msk.f32.gmra.mxu3 %vm422_vm0, %v689_v3 }
  0x60   : > { %1684 = vmatmul.msk.f32.gmra.mxu0 %vm422_vm0, %v410_v4  ;;  %1694 = vmatmul.msk.f32.gmra.mxu1 %vm422_vm0, %v392_v5 }
  0x61   : > { %1712 = vmatmul.msk.f32.gmra.mxu2 %vm422_vm0, %v584_v6 }
  0x62   : > { %1730 = vmatmul.msk.f32.gmra.mxu3 %vm422_vm0, %v690_v7 }
  0x68   : > { %1685 = vmatmul.msk.f32.gmra.mxu0 %vm422_vm0, %v411_v8  ;;  %1695 = vmatmul.msk.f32.gmra.mxu1 %vm422_vm0, %v393_v9 }
  0x69   : > { %1713 = vmatmul.msk.f32.gmra.mxu2 %vm422_vm0, %v585_v10 }
  0x6a   : > { %1731 = vmatmul.msk.f32.gmra.mxu3 %vm422_vm0, %v691_v11 }
  0x70   : > { %1686 = vmatmul.msk.f32.gmra.mxu0 %vm422_vm0, %v412_v12  ;;  %1696 = vmatmul.msk.f32.gmra.mxu1 %vm422_vm0, %v394_v13 }
  0x71   : > { %1714 = vmatmul.msk.f32.gmra.mxu2 %vm422_vm0, %v586_v14 }
  0x72   : > { %1732 = vmatmul.msk.f32.gmra.mxu3 %vm422_vm0, %v692_v15 }
  0x78   : > { %1741 = vmatmul.msk.f32.vlgmr.msrb.gmra.mxu0 %vm422_vm0, %v789_v16 }
  0x80   : > { %1742 = vmatmul.msk.f32.gmra.mxu0 %vm422_vm0, %v790_v17 }
  0x88   : > { %1743 = vmatmul.msk.f32.gmra.mxu0 %vm422_vm0, %v791_v18  ;;  %v2346_v18 = vld [vmem:[%s2689_s2] ss:$0 sm:$0xff] }
  0x90   : > { %1744 = vmatmul.msk.f32.gmra.mxu0 %vm422_vm0, %v792_v19 }
  0x98   : > { %1745 = vmatmul.msk.f32.gmra.mxu0 %vm422_vm0, %v793_v20 }
  0xa0   : > { %1746 = vmatmul.msk.f32.gmra.mxu0 %vm422_vm0, %v794_v21 }
  0xa4   : > { %v470_v22 = vpop.f32.mrf.mxu0 }
  0xa5   : > { %v547_v42 = vpop.f32.mrf.mxu1 }
  0xa6   : > { %v548_v59 = vadd.f32 %v547_v42, %v470_v22 }
  0xa8   : > { %1747 = vmatmul.msk.f32.gmra.mxu0 %vm422_vm0, %v795_v23 }
  0xab   : > { %v643_v43 = vpop.f32.mrf.mxu2 }
  0xac   : > { %v673_v61 = vadd.f32 %v643_v43, %v548_v59 }
  0xad   : > { %v473_v24 = vpop.f32.mrf.mxu0  ;;  %v749_v45 = vpop.f32.mrf.mxu3 }
  0xae   : > { %v550_v49 = vpop.f32.mrf.mxu1  ;;  %v779_v63 = vadd.f32 %v749_v45, %v673_v61 }
  0xaf   : > { %v551_v1 = vadd.f32 %v550_v49, %v473_v24 }
  0xb0   : > { %1748 = vmatmul.msk.f32.gmra.mxu0 %vm422_vm0, %v796_v25 }
  0xb4   : > { %v646_v50 = vpop.f32.mrf.mxu2 }
  0xb5   : > { %v2273_v26 = vpop.f32.mrf.mxu0  ;;  %v752_v55 = vpop.f32.mrf.mxu3  ;;  %v674_v4 = vadd.f32 %v646_v50, %v551_v1 }
  0xb6   : > { %v553_v57 = vpop.f32.mrf.mxu1 }
  0xb7   : > { %v780_v6 = vadd.f32 %v752_v55, %v674_v4  ;;  %v554_v9 = vadd.f32 %v553_v57, %v2273_v26 }
  0xb8   : > { %1749 = vmatmul.msk.f32.gmra.mxu0 %vm422_vm0, %v797_v27 }
  0xbc   : > { %v649_v60 = vpop.f32.mrf.mxu2 }
  0xbd   : > { %v2283_v30 = vpop.f32.mrf.mxu0  ;;  %v755_v62 = vpop.f32.mrf.mxu3  ;;  %v675_v11 = vadd.f32 %v649_v60, %v554_v9 }
  0xbe   : > { %v556_v3 = vpop.f32.mrf.mxu1 }
  0xbf   : > { %v781_v14 = vadd.f32 %v755_v62, %v675_v11  ;;  %v557_v16 = vadd.f32 %v556_v3, %v2283_v30 }
  0xc0   : > { %1750 = vmatmul.msk.f32.gmra.mxu0 %vm422_vm0, %v798_v31 }
  0xc4   : > { %v652_v5 = vpop.f32.mrf.mxu2 }
  0xc5   : > { %v2290_v33 = vpop.f32.mrf.mxu0  ;;  %v758_v7 = vpop.f32.mrf.mxu3  ;;  %v676_v22 = vadd.f32 %v652_v5, %v557_v16 }
  0xc6   : > { %v559_v12 = vpop.f32.mrf.mxu1 }
  0xc7   : > { %v782_v26 = vadd.f32 %v758_v7, %v676_v22  ;;  %v560_v29 = vadd.f32 %v559_v12, %v2290_v33 }
  0xcc   : > { %v655_v13 = vpop.f32.mrf.mxu2 }
  0xcd   : > { %v2298_v36 = vpop.f32.mrf.mxu0  ;;  %v761_v19 = vpop.f32.mrf.mxu3  ;;  %v677_v31 = vadd.f32 %v655_v13, %v560_v29  ;;  %v1050_v29 = vld [vmem:[%s2691_s4 + $0x38] sm:$0xff] }
  0xce   : > { %v562_v25 = vpop.f32.mrf.mxu1  ;;  %1145 = vmatpush.msrb.mxu3 %v1050_v29 }
  0xcf   : > { %v783_v34 = vadd.f32 %v761_v19, %v677_v31  ;;  %v563_v38 = vadd.f32 %v562_v25, %v2298_v36  ;;  %v1049_v31 = vld [vmem:[%s2691_s4 + $0x30] sm:$0xff] }
  0xd0   : > { %1146 = vmatpush.msrb.mxu3 %v1049_v31 }
  0xd4   : > { %v658_v27 = vpop.f32.mrf.mxu2 }
  0xd5   : > { %v2306_v39 = vpop.f32.mrf.mxu0  ;;  %v764_v32 = vpop.f32.mrf.mxu3  ;;  %v678_v45 = vadd.f32 %v658_v27, %v563_v38  ;;  %v1755_v38 = vld [vmem:[%s2691_s4 + $0x60] sm:$0xff] }
  0xd6   : > { %v565_v35 = vpop.f32.mrf.mxu1 }
  0xd7   : > { %v784_v33 = vadd.f32 %v764_v32, %v678_v45  ;;  %v566_v50 = vadd.f32 %v565_v35, %v2306_v39  ;;  %v1756_v32 = vld [vmem:[%s2691_s4 + $0x68] sm:$0xff]  ;;  %v1778_v35 = vld [vmem:[%s2691_s4 + $0xb8] sm:$0xff] }
  0xd8   : > { %1213 = vmatpush.msra.mxu1 %v1778_v35 }
  0xdc   : > { %v661_v41 = vpop.f32.mrf.mxu2 }
  0xdd   : > { %v2314_v44 = vpop.f32.mrf.mxu0  ;;  %v767_v48 = vpop.f32.mrf.mxu3  ;;  %v679_v54 = vadd.f32 %v661_v41, %v566_v50  ;;  %v1754_v41 = vld [vmem:[%s2691_s4 + $0x58] sm:$0xff]  ;;  %v1773_v50 = vld [vmem:[%s2691_s4 + $0x90] sm:$0xff] }
  0xde   : > { %v568_v53 = vpop.f32.mrf.mxu1 }
  0xdf   : > { %v785_v55 = vadd.f32 %v767_v48, %v679_v54  ;;  %v569_v59 = vadd.f32 %v568_v53, %v2314_v44  ;;  %v1774_v48 = vld [vmem:[%s2691_s4 + $0x98] sm:$0xff]  ;;  %v1044_v53 = vld [vmem:[%s2691_s4 + $0x8] sm:$0xff]  ;;  %v1934_v54 = vmov 0.0  }
  0xe0   : > { %1017 = vst.msk [vmem:[#allocation2] sm:$0x3] %vm1016_vm1, %v1934_v54 }
  0xe1   : > { %1019 = vst.msk [vmem:[#allocation2 + $0xa] sm:$0x3] %vm1016_vm1, %v1934_v54 }
  0xe2   : > { %1020 = vst.msk [vmem:[#allocation2 + $0xc] sm:$0x3] %vm1016_vm1, %v1934_v54 }
  0xe3   : > { %1024 = vst.msk [vmem:[#allocation2 + $0x16] sm:$0x3] %vm1016_vm1, %v1934_v54 }
  0xe4   : > { %v664_v36 = vpop.f32.mrf.mxu2  ;;  %1025 = vst.msk [vmem:[#allocation2 + $0x18] sm:$0x3] %vm1016_vm1, %v1934_v54 }
  0xe5   : > { %v2325_v51 = vpop.f32.mrf.mxu0  ;;  %v770_v56 = vpop.f32.mrf.mxu3  ;;  %1030 = vst.msk [vmem:[#allocation2 + $0x22] sm:$0x3] %vm1016_vm1, %v1934_v54 }
  0xe6   : > { %v571_v1 = vpop.f32.mrf.mxu1  ;;  %1031 = vst.msk [vmem:[#allocation2 + $0x24] sm:$0x3] %vm1016_vm1, %v1934_v54 }
  0xe7   : > { %v572_v5 = vadd.f32 %v571_v1, %v2325_v51  ;;  %1036 = vst.msk [vmem:[#allocation2 + $0x2e] sm:$0x3] %vm1016_vm1, %v1934_v54 }
  0xec   : > { %v667_v39 = vpop.f32.mrf.mxu2 }
  0xed   : > { %v2339_v58 = vpop.f32.mrf.mxu0  ;;  %v773_v7 = vpop.f32.mrf.mxu3 }
  0xee   : > { %v574_v44 = vpop.f32.mrf.mxu1 }
  0xef   : > { %v575_v12 = vadd.f32 %v574_v44, %v2339_v58  ;;  %v1789_v44 = vld [vmem:[%s2691_s4 + $0xe0] sm:$0xff] }
  0xf5   : > { %v855_v0 = vpop.f32.mrf.mxu0  ;;  %v776_v19 = vpop.f32.mrf.mxu3 }
  0xf6   : > { %v885_v2 = vadd.f32 %v855_v0, %v779_v63  ;;  %v680_v63 = vadd.f32 %v664_v36, %v569_v59  ;;  %v1751_v36 = vld [vmem:[%s2691_s4 + $0x40] sm:$0xff] }
  0xf8   : > { %895 = vst [vmem:[#allocation3] sm:$0xff] %v885_v2  ;;  %v786_v3 = vadd.f32 %v770_v56, %v680_v63  ;;  %v1772_v56 = vld [vmem:[%s2691_s4 + $0x88] sm:$0xff]  ;;  %v1806_v63 = vld [vmem:[%s2691_s4 + $0x138] sm:$0xff] }
  0xfd   : > { %v858_v8 = vpop.f32.mrf.mxu0 }
  0xfe   : > { %v886_v10 = vadd.f32 %v858_v8, %v780_v6  ;;  %v681_v8 = vadd.f32 %v667_v39, %v572_v5  ;;  %v1791_v39 = vld [vmem:[%s2691_s4 + $0xf0] sm:$0xff] }
 0x100   : > { %896 = vst [vmem:[#allocation3 + $0x8] sm:$0xff] %v886_v10  ;;  %v787_v9 = vadd.f32 %v773_v7, %v681_v8  ;;  %v670_v10 = vpop.f32.mrf.mxu2  ;;  %v1790_v7 = vld [vmem:[%s2691_s4 + $0xe8] sm:$0xff] }
 0x101   : > { %v682_v16 = vadd.f32 %v670_v10, %v575_v12  ;;  %v1804_v8 = vld [vmem:[%s2691_s4 + $0x128] sm:$0xff] }
 0x103   : > { %v788_v51 = vadd.f32 %v776_v19, %v682_v16 }
 0x105   : > { %v861_v15 = vpop.f32.mrf.mxu0 }
 0x106   : > { %v887_v17 = vadd.f32 %v861_v15, %v781_v14 }
 0x107   : > { %v905_v20 = vld [vmem:[#allocation3] ss:$2 sm:$0xff]  ;;  %v915_v21 = vld [vmem:[#allocation3 + $0x1] ss:$2 sm:$0xff] }
 0x108   : > { %897 = vst [vmem:[#allocation3 + $0x10] sm:$0xff] %v887_v17  ;;  %v924_v23 = vmax.f32 %v905_v20, %v915_v21 }
 0x10a   : > { %v933_v24 = vadd.f32 %v2346_v18, %v924_v23 }
 0x10c   : > { %970 = vmatmul.f32.vlgmr.msrb.gmra.mxu1 %v933_v24 }
 0x10d   : > { %v864_v28 = vpop.f32.mrf.mxu0 }
 0x10e   : > { %v888_v30 = vadd.f32 %v864_v28, %v782_v26 }
 0x110   : > { %898 = vst [vmem:[#allocation3 + $0x18] sm:$0xff] %v888_v30  ;;  %v1757_v30 = vld [vmem:[%s2691_s4 + $0x70] sm:$0xff] }
 0x115   : > { %v867_v37 = vpop.f32.mrf.mxu0 }
 0x116   : > { %v889_v40 = vadd.f32 %v867_v37, %v783_v34  ;;  %v1048_v34 = vld [vmem:[%s2691_s4 + $0x28] sm:$0xff]  ;;  %v1777_v37 = vld [vmem:[%s2691_s4 + $0xb0] sm:$0xff] }
 0x117   : > { %v907_v42 = vld [vmem:[#allocation3 + $0x10] ss:$2 sm:$0xff]  ;;  %v917_v43 = vld [vmem:[#allocation3 + $0x11] ss:$2 sm:$0xff]  ;;  %1147 = vmatpush.msrb.mxu3 %v1048_v34  ;;  %1214 = vmatpush.msra.mxu1 %v1777_v37 }
 0x118   : > { %899 = vst [vmem:[#allocation3 + $0x20] sm:$0xff] %v889_v40  ;;  %v925_v46 = vmax.f32 %v907_v42, %v917_v43  ;;  %v1047_v40 = vld [vmem:[%s2691_s4 + $0x20] sm:$0xff]  ;;  %v1046_v42 = vld [vmem:[%s2691_s4 + $0x18] sm:$0xff] }
 0x119   : > { %1148 = vmatpush.msrb.mxu3 %v1047_v40 }
 0x11a   : > { %v934_v47 = vadd.f32 %v2346_v18, %v925_v46  ;;  %v1776_v46 = vld [vmem:[%s2691_s4 + $0xa8] sm:$0xff] }
 0x11b   : > { %1149 = vmatpush.msrb.mxu3 %v1046_v42  ;;  %1215 = vmatpush.msra.mxu1 %v1776_v46 }
 0x11c   : > { %973 = vmatmul.f32.gmra.mxu1 %v934_v47  ;;  %v1775_v47 = vld [vmem:[%s2691_s4 + $0xa0] sm:$0xff] }
 0x11d   : > { %v870_v49 = vpop.f32.mrf.mxu0  ;;  %1216 = vmatpush.msra.mxu1 %v1775_v47 }
 0x11e   : > { %v890_v52 = vadd.f32 %v870_v49, %v784_v33  ;;  %v1753_v33 = vld [vmem:[%s2691_s4 + $0x50] sm:$0xff] }
 0x11f   : > { %v1045_v49 = vld [vmem:[%s2691_s4 + $0x10] sm:$0xff]  ;;  %1217 = vmatpush.msra.mxu1 %v1774_v48 }
 0x120   : > { %900 = vst [vmem:[#allocation3 + $0x28] sm:$0xff] %v890_v52  ;;  %1150 = vmatpush.msrb.mxu3 %v1045_v49  ;;  %v1752_v52 = vld [vmem:[%s2691_s4 + $0x48] sm:$0xff] }
 0x121   : > { %1218 = vmatpush.msra.mxu1 %v1773_v50 }
 0x122   : > { %1151 = vmatpush.msrb.mxu3 %v1044_v53 }
 0x123   : > { %1219 = vmatpush.msra.mxu1 %v1772_v56  ;;  %v1427_v56 = vld [vmem:[%s2693_s6 + $0x30] sm:$0xff] }
 0x125   : > { %v873_v57 = vpop.f32.mrf.mxu0 }
 0x126   : > { %v891_v60 = vadd.f32 %v873_v57, %v785_v55  ;;  %v1043_v55 = vld [vmem:[%s2691_s4] sm:$0xff] }
 0x127   : > { %v909_v61 = vld [vmem:[#allocation3 + $0x20] ss:$2 sm:$0xff]  ;;  %v919_v62 = vld [vmem:[#allocation3 + $0x21] ss:$2 sm:$0xff]  ;;  %1152 = vmatpush.msrb.mxu3 %v1043_v55  ;;  %v1771_v57 = vld [vmem:[%s2691_s4 + $0x80] sm:$0xff] }
 0x128   : > { %901 = vst [vmem:[#allocation3 + $0x30] sm:$0xff] %v891_v60  ;;  %v926_v0 = vmax.f32 %v909_v61, %v919_v62  ;;  %1220 = vmatpush.msra.mxu1 %v1771_v57  ;;  %v1792_v62 = vld [vmem:[%s2691_s4 + $0xf8] sm:$0xff]  ;;  %v1426_v57 = vld [vmem:[%s2693_s6 + $0x28] sm:$0xff] }
 0x129   : > { %1361 = vmatpush.msra.mxu3 %v1806_v63  ;;  %v1428_v55 = vld [vmem:[%s2693_s6 + $0x38] sm:$0xff] }
 0x12a   : > { %v935_v2 = vadd.f32 %v2346_v18, %v926_v0  ;;  %1446 = vmatpush.msra.mxu0 %v1428_v55 }
 0x12c   : > { %976 = vmatmul.f32.gmra.mxu1 %v935_v2  ;;  %1447 = vmatpush.msra.mxu0 %v1427_v56 }
 0x12d   : > { %v876_v4 = vpop.f32.mrf.mxu0 }
 0x12e   : > { %v892_v6 = vadd.f32 %v876_v4, %v786_v3  ;;  %v1805_v3 = vld [vmem:[%s2691_s4 + $0x130] sm:$0xff]  ;;  %1448 = vmatpush.msra.mxu0 %v1426_v57 }
 0x12f   : > { %1362 = vmatpush.msra.mxu3 %v1805_v3 }
 0x130   : > { %902 = vst [vmem:[#allocation3 + $0x38] sm:$0xff] %v892_v6 }
 0x131   : > { %1363 = vmatpush.msra.mxu3 %v1804_v8 }
 0x135   : > { %v879_v11 = vpop.f32.mrf.mxu0 }
 0x136   : > { %v893_v13 = vadd.f32 %v879_v11, %v787_v9  ;;  %v1803_v9 = vld [vmem:[%s2691_s4 + $0x120] sm:$0xff] }
 0x137   : > { %v911_v14 = vld [vmem:[#allocation3 + $0x30] ss:$2 sm:$0xff]  ;;  %v921_v15 = vld [vmem:[#allocation3 + $0x31] ss:$2 sm:$0xff]  ;;  %1364 = vmatpush.msra.mxu3 %v1803_v9 }
 0x138   : > { %903 = vst [vmem:[#allocation3 + $0x40] sm:$0xff] %v893_v13  ;;  %v927_v17 = vmax.f32 %v911_v14, %v921_v15  ;;  %v1788_v13 = vld [vmem:[%s2691_s4 + $0xd8] sm:$0xff]  ;;  %v1787_v15 = vld [vmem:[%s2691_s4 + $0xd0] sm:$0xff] }
 0x139   : > { %v1802_v14 = vld [vmem:[%s2691_s4 + $0x118] sm:$0xff] }
 0x13a   : > { %v936_v20 = vadd.f32 %v2346_v18, %v927_v17  ;;  %1365 = vmatpush.msra.mxu3 %v1802_v14 }
 0x13c   : > { %979 = vmatmul.f32.gmra.mxu1 %v936_v20  ;;  %v1801_v20 = vld [vmem:[%s2691_s4 + $0x110] sm:$0xff] }
 0x13d   : > { %v882_v21 = vpop.f32.mrf.mxu0  ;;  %1366 = vmatpush.msra.mxu3 %v1801_v20 }
 0x13e   : > { %v894_v22 = vadd.f32 %v882_v21, %v788_v51  ;;  %v1786_v51 = vld [vmem:[%s2691_s4 + $0xc8] sm:$0xff] }
 0x13f   : > { %v1800_v21 = vld [vmem:[%s2691_s4 + $0x108] sm:$0xff] }
 0x140   : > { %904 = vst [vmem:[#allocation3 + $0x48] sm:$0xf] %v894_v22  ;;  %1367 = vmatpush.msra.mxu3 %v1800_v21 }
 0x147   : > { %v913_v23 = vld [vmem:[#allocation3 + $0x40] ss:$2 sm:$0x3f]  ;;  %v923_v24 = vld [vmem:[#allocation3 + $0x41] ss:$2 sm:$0x3f] }
 0x148   : > { %v928_v25 = vmax.f32 %v913_v23, %v923_v24 }
 0x14a   : > { %v937_v26 = vadd.f32 %v2346_v18, %v928_v25  ;;  %v1758_v18 = vld [vmem:[%s2691_s4 + $0x78] sm:$0xff] }
 0x14b   : > { %1092 = vmatpush.msrb.mxu2 %v1758_v18 }
 0x14c   : > { %982 = vmatmul.f32.gmra.mxu1 %v937_v26 }
 0x14d   : > { %1093 = vmatpush.msrb.mxu2 %v1757_v30 }
 0x14f   : > { %1094 = vmatpush.msrb.mxu2 %v1756_v32 }
 0x151   : > { %1095 = vmatpush.msrb.mxu2 %v1755_v38 }
 0x153   : > { %1096 = vmatpush.msrb.mxu2 %v1754_v41 }
 0x155   : > { %1097 = vmatpush.msrb.mxu2 %v1753_v33 }
 0x157   : > { %1098 = vmatpush.msrb.mxu2 %v1752_v52 }
 0x159   : > { %1099 = vmatpush.msrb.mxu2 %v1751_v36 }
 0x15b   : > { %1287 = vmatpush.msra.mxu2 %v1792_v62 }
 0x15d   : > { %1288 = vmatpush.msra.mxu2 %v1791_v39 }
 0x15f   : > { %1289 = vmatpush.msra.mxu2 %v1790_v7  ;;  %v1422_v7 = vld [vmem:[%s2693_s6 + $0x8] sm:$0xff] }
 0x161   : > { %1290 = vmatpush.msra.mxu2 %v1789_v44 }
 0x163   : > { %1291 = vmatpush.msra.mxu2 %v1788_v13 }
 0x165   : > { %1292 = vmatpush.msra.mxu2 %v1787_v15 }
 0x167   : > { %1293 = vmatpush.msra.mxu2 %v1786_v51 }
 0x189   : > { %v2359_v58 = vpop.f32.mrf.mxu1 }
 0x18a   : > { %991 = vrot.lane.b32.xlu0 %v2359_v58, %s1933_s19 }
 0x199   : > { %v2363_v27 = vpop.f32.mrf.mxu1 }
 0x19a   : > { %993 = vrot.lane.b32.xlu0 %v2363_v27, %s1933_s19 }
 0x1a9   : > { %v2367_v28 = vpop.f32.mrf.mxu1 }
 0x1aa   : > { %995 = vrot.lane.b32.xlu1 %v2367_v28, %s1933_s19 }
 0x1b9   : > { %v2407_v43 = vpop.f32.mrf.mxu1 }
 0x1ba   : > { %997 = vrot.lane.b32.xlu1 %v2407_v43, %s1933_s19 }
 0x1c9   : > { %v2411_v45 = vpop.f32.mrf.mxu1 }
 0x1ca   : > { %999 = vrot.lane.b32.xlu2 %v2411_v45, %s1933_s19 }
 0x1fc   : > { %v992_v59 = vpop.permute.xlu0 %991 }
 0x1fd   : > { %v1006_v60 = vmax.f32 %v2359_v58, %v992_v59 }
 0x1ff   : > { %v1011_v61 = vmax.f32 %v1006_v60, 0.0 }
 0x201   : > { %1018 = vst.msk [vmem:[#allocation2 + $0x2] sm:$0xff] %vm422_vm0, %v1011_v61  ;;  %v1425_v61 = vld [vmem:[%s2693_s6 + $0x20] sm:$0xff] }
 0x202   : > { %1449 = vmatpush.msra.mxu0 %v1425_v61 }
 0x208   : > { %v1051_v0 = vld [vmem:[#allocation2 + $0x1] sm:$0xff] }
 0x209   : > { %v1037_v1 = vld [vmem:[#allocation2] sm:$0xff]  ;;  %1759 = vmatmul.msk.f32.vlgmr.msrb.gmra.mxu2 %vm422_vm0, %v1051_v0 }
 0x20a   : > { %v1172_v2 = vld [vmem:[#allocation2 + $0x2] sm:$0xff]  ;;  %1765 = vmatmul.msk.f32.vlgmr.msrb.gmra.mxu3 %vm422_vm0, %v1037_v1 }
 0x20b   : > { %1779 = vmatmul.msk.f32.vlgmr.msra.gmra.mxu1 %vm422_vm0, %v1172_v2  ;;  %v1424_v2 = vld [vmem:[%s2693_s6 + $0x18] sm:$0xff] }
 0x20c   : > { %v994_v4 = vpop.permute.xlu0 %993  ;;  %1450 = vmatpush.msra.mxu0 %v1424_v2 }
 0x20d   : > { %v1007_v5 = vmax.f32 %v2363_v27, %v994_v4  ;;  %v1785_v27 = vld [vmem:[%s2691_s4 + $0xc0] sm:$0xff]  ;;  %v1423_v4 = vld [vmem:[%s2693_s6 + $0x10] sm:$0xff] }
 0x20e   : > { %1294 = vmatpush.msra.mxu2 %v1785_v27  ;;  %1451 = vmatpush.msra.mxu0 %v1423_v4 }
 0x20f   : > { %v1012_v6 = vmax.f32 %v1007_v5, 0.0 }
 0x210   : > { %1452 = vmatpush.msra.mxu0 %v1422_v7 }
 0x211   : > { %1022 = vst.msk [vmem:[#allocation2 + $0xc] sm:$0xfc] %vm1021_vm2, %v1012_v6 }
 0x218   : > { %v1052_v10 = vld [vmem:[#allocation2 + $0x9] sm:$0xff] }
 0x219   : > { %v1038_v11 = vld [vmem:[#allocation2 + $0x8] sm:$0xff]  ;;  %1760 = vmatmul.msk.f32.gmra.mxu2 %vm422_vm0, %v1052_v10  ;;  %v1421_v10 = vld [vmem:[%s2693_s6] sm:$0xff] }
 0x21a   : > { %v1173_v12 = vld [vmem:[#allocation2 + $0xa] sm:$0xff]  ;;  %1766 = vmatmul.msk.f32.gmra.mxu3 %vm422_vm0, %v1038_v11  ;;  %1453 = vmatpush.msra.mxu0 %v1421_v10 }
 0x21b   : > { %1780 = vmatmul.msk.f32.gmra.mxu1 %vm422_vm0, %v1173_v12  ;;  %v1247_v46 = vld [vmem:[#allocation2 + $0xb] sm:$0xff] }
 0x21c   : > { %v996_v16 = vpop.permute.xlu1 %995  ;;  %v1321_v47 = vld [vmem:[#allocation2 + $0xc] sm:$0xff] }
 0x21d   : > { %v1008_v17 = vmax.f32 %v2367_v28, %v996_v16  ;;  %v1799_v28 = vld [vmem:[%s2691_s4 + $0x100] sm:$0xff]  ;;  %v1528_v10 = vld [vmem:[%s2694_s7 + $0x68] sm:$0xff] }
 0x21e   : > { %1368 = vmatpush.msra.mxu3 %v1799_v28 }
 0x21f   : > { %v1013_v19 = vmax.f32 %v1008_v17, 0.0 }
 0x221   : > { %1023 = vst.msk [vmem:[#allocation2 + $0x14] sm:$0x3] %vm1016_vm1, %v1013_v19 }
 0x222   : > { %1027 = vst.msk [vmem:[#allocation2 + $0x16] sm:$0xf0] %vm1026_vm3, %v1013_v19 }
 0x224   : > { %v1000_v22 = vpop.permute.xlu2 %999 }
 0x225   : > { %v1010_v23 = vmax.f32 %v2411_v45, %v1000_v22  ;;  %v1320_v45 = vld [vmem:[#allocation2 + $0x4] sm:$0xff] }
 0x227   : > { %v1015_v24 = vmax.f32 %v1010_v23, 0.0 }
 0x228   : > { %v1053_v25 = vld [vmem:[#allocation2 + $0x11] sm:$0xff] }
 0x229   : > { %v1039_v26 = vld [vmem:[#allocation2 + $0x10] sm:$0xff]  ;;  %1035 = vst.msk [vmem:[#allocation2 + $0x28] sm:$0x3f] %vm1034_vm4, %v1015_v24  ;;  %1761 = vmatmul.msk.f32.gmra.mxu2 %vm422_vm0, %v1053_v25 }
 0x22a   : > { %v1174_v58 = vld [vmem:[#allocation2 + $0x12] sm:$0xff]  ;;  %1767 = vmatmul.msk.f32.gmra.mxu3 %vm422_vm0, %v1039_v26 }
 0x22b   : > { %1781 = vmatmul.msk.f32.gmra.mxu1 %vm422_vm0, %v1174_v58  ;;  %v1248_v48 = vld [vmem:[#allocation2 + $0x13] sm:$0xff] }
 0x22c   : > { %v998_v18 = vpop.permute.xlu1 %997  ;;  %v1322_v33 = vld [vmem:[#allocation2 + $0x14] sm:$0xff] }
 0x22d   : > { %v1009_v29 = vmax.f32 %v2407_v43, %v998_v18  ;;  %v1246_v43 = vld [vmem:[#allocation2 + $0x3] sm:$0xff] }
 0x22f   : > { %v1014_v30 = vmax.f32 %v1009_v29, 0.0 }
 0x230   : > { %v1056_v40 = vld [vmem:[#allocation2 + $0x29] sm:$0xf] }
 0x231   : > { %1029 = vst.msk [vmem:[#allocation2 + $0x1e] sm:$0xf] %vm1028_vm5, %v1014_v30  ;;  %v1042_v41 = vld [vmem:[#allocation2 + $0x28] sm:$0xf]  ;;  %v1325_v36 = vld [vmem:[#allocation2 + $0x2c] sm:$0xf] }
 0x232   : > { %1033 = vst.msk [vmem:[#allocation2 + $0x20] sm:$0xc0] %vm1032_vm6, %v1014_v30  ;;  %v1177_v42 = vld [vmem:[#allocation2 + $0x2a] sm:$0xf] }
 0x233   : > { %v1251_v54 = vld [vmem:[#allocation2 + $0x2b] sm:$0xf] }
 0x238   : > { %v1054_v31 = vld [vmem:[#allocation2 + $0x19] sm:$0xff] }
 0x239   : > { %v1040_v32 = vld [vmem:[#allocation2 + $0x18] sm:$0xff]  ;;  %1762 = vmatmul.msk.f32.gmra.mxu2 %vm422_vm0, %v1054_v31  ;;  %v1055_v35 = vld [vmem:[#allocation2 + $0x21] sm:$0xff]  ;;  %v1866_v31 = vld [vmem:[%s2692_s5] ss:$0 sm:$0xff] }
 0x23a   : > { %v1175_v34 = vld [vmem:[#allocation2 + $0x1a] sm:$0xff]  ;;  %1768 = vmatmul.msk.f32.gmra.mxu3 %vm422_vm0, %v1040_v32  ;;  %v1176_v38 = vld [vmem:[#allocation2 + $0x22] sm:$0xff] }
 0x23b   : > { %1782 = vmatmul.msk.f32.gmra.mxu1 %vm422_vm0, %v1175_v34  ;;  %v1041_v37 = vld [vmem:[#allocation2 + $0x20] sm:$0xff] }
 0x23c   : > { %v1249_v49 = vld [vmem:[#allocation2 + $0x1b] sm:$0xff]  ;;  %v1250_v52 = vld [vmem:[#allocation2 + $0x23] sm:$0xff] }
 0x23d   : > { %v1323_v50 = vld [vmem:[#allocation2 + $0x1c] sm:$0xff]  ;;  %v1324_v53 = vld [vmem:[#allocation2 + $0x24] sm:$0xff] }
 0x241   : > { %1763 = vmatmul.msk.f32.gmra.mxu2 %vm422_vm0, %v1055_v35 }
 0x242   : > { %1769 = vmatmul.msk.f32.gmra.mxu3 %vm422_vm0, %v1041_v37 }
 0x243   : > { %1783 = vmatmul.msk.f32.gmra.mxu1 %vm422_vm0, %v1176_v38 }
 0x249   : > { %1764 = vmatmul.msk.f32.gmra.mxu2 %vm422_vm0, %v1056_v40 }
 0x24a   : > { %1770 = vmatmul.msk.f32.gmra.mxu3 %vm422_vm0, %v1042_v41 }
 0x24b   : > { %1784 = vmatmul.msk.f32.gmra.mxu1 %vm422_vm0, %v1177_v42 }
 0x251   : > { %1793 = vmatmul.msk.f32.vlgmr.msra.gmra.mxu2 %vm422_vm0, %v1246_v43 }
 0x252   : > { %1807 = vmatmul.msk.f32.vlgmr.msra.gmra.mxu3 %vm422_vm0, %v1320_v45 }
 0x259   : > { %1794 = vmatmul.msk.f32.gmra.mxu2 %vm422_vm0, %v1247_v46 }
 0x25a   : > { %1808 = vmatmul.msk.f32.gmra.mxu3 %vm422_vm0, %v1321_v47 }
 0x261   : > { %1795 = vmatmul.msk.f32.gmra.mxu2 %vm422_vm0, %v1248_v48 }
 0x262   : > { %1809 = vmatmul.msk.f32.gmra.mxu3 %vm422_vm0, %v1322_v33 }
 0x269   : > { %1796 = vmatmul.msk.f32.gmra.mxu2 %vm422_vm0, %v1249_v49 }
 0x26a   : > { %1810 = vmatmul.msk.f32.gmra.mxu3 %vm422_vm0, %v1323_v50 }
 0x271   : > { %1797 = vmatmul.msk.f32.gmra.mxu2 %vm422_vm0, %v1250_v52 }
 0x272   : > { %1811 = vmatmul.msk.f32.gmra.mxu3 %vm422_vm0, %v1324_v53 }
 0x279   : > { %1798 = vmatmul.msk.f32.gmra.mxu2 %vm422_vm0, %v1251_v54 }
 0x27a   : > { %1812 = vmatmul.msk.f32.gmra.mxu3 %vm422_vm0, %v1325_v36 }
 0x288   : > { %v1222_v9 = vpop.f32.mrf.mxu1 }
 0x28c   : > { %v1101_v59 = vpop.f32.mrf.mxu2 }
 0x28d   : > { %v1154_v60 = vpop.f32.mrf.mxu3 }
 0x28e   : > { %v1155_v11 = vadd.f32 %v1154_v60, %v1101_v59 }
 0x290   : > { %v1240_v12 = vadd.f32 %v1222_v9, %v1155_v11 }
 0x298   : > { %v1225_v16 = vpop.f32.mrf.mxu1 }
 0x29c   : > { %v1104_v62 = vpop.f32.mrf.mxu2 }
 0x29d   : > { %v1157_v63 = vpop.f32.mrf.mxu3 }
 0x29e   : > { %v1158_v17 = vadd.f32 %v1157_v63, %v1104_v62 }
 0x2a0   : > { %v1241_v20 = vadd.f32 %v1225_v16, %v1158_v17 }
 0x2a8   : > { %v1228_v23 = vpop.f32.mrf.mxu1 }
 0x2ac   : > { %v1107_v0 = vpop.f32.mrf.mxu2 }
 0x2ad   : > { %v1160_v1 = vpop.f32.mrf.mxu3 }
 0x2ae   : > { %v1161_v24 = vadd.f32 %v1160_v1, %v1107_v0 }
 0x2b0   : > { %v1242_v26 = vadd.f32 %v1228_v23, %v1161_v24  ;;  %v1524_v23 = vld [vmem:[%s2694_s7 + $0x48] sm:$0xff]  ;;  %v1523_v24 = vld [vmem:[%s2694_s7 + $0x40] sm:$0xff] }
 0x2b8   : > { %v1231_v18 = vpop.f32.mrf.mxu1 }
 0x2bc   : > { %v1110_v39 = vpop.f32.mrf.mxu2 }
 0x2bd   : > { %v1163_v3 = vpop.f32.mrf.mxu3 }
 0x2be   : > { %v1164_v29 = vadd.f32 %v1163_v3, %v1110_v39 }
 0x2c0   : > { %v1243_v37 = vadd.f32 %v1231_v18, %v1164_v29  ;;  %v1234_v46 = vpop.f32.mrf.mxu1  ;;  %v1517_v18 = vld [vmem:[%s2694_s7 + $0x10] sm:$0xff]  ;;  %v1516_v29 = vld [vmem:[%s2694_s7 + $0x8] sm:$0xff] }
 0x2c4   : > { %v1113_v5 = vpop.f32.mrf.mxu2 }
 0x2c5   : > { %v1166_v6 = vpop.f32.mrf.mxu3 }
 0x2c6   : > { %v1167_v43 = vadd.f32 %v1166_v6, %v1113_v5 }
 0x2c8   : > { %v1244_v47 = vadd.f32 %v1234_v46, %v1167_v43  ;;  %v1237_v55 = vpop.f32.mrf.mxu1 }
 0x2cc   : > { %v1116_v8 = vpop.f32.mrf.mxu2 }
 0x2cd   : > { %v1169_v44 = vpop.f32.mrf.mxu3 }
 0x2ce   : > { %v1170_v50 = vadd.f32 %v1169_v44, %v1116_v8  ;;  %v1530_v8 = vld [vmem:[%s2694_s7 + $0x78] sm:$0xff]  ;;  %v1529_v44 = vld [vmem:[%s2694_s7 + $0x70] sm:$0xff] }
 0x2cf   : > { %1535 = vmatpush.msrb.mxu1 %v1530_v8 }
 0x2d0   : > { %v1245_v56 = vadd.f32 %v1237_v55, %v1170_v50 }
 0x2d1   : > { %1536 = vmatpush.msrb.mxu1 %v1529_v44 }
 0x2d3   : > { %1537 = vmatpush.msrb.mxu1 %v1528_v10 }
 0x2d4   : > { %v1296_v13 = vpop.f32.mrf.mxu2 }
 0x2d5   : > { %v1370_v14 = vpop.f32.mrf.mxu3  ;;  %v1314_v15 = vadd.f32 %v1296_v13, %v1240_v12  ;;  %v1527_v12 = vld [vmem:[%s2694_s7 + $0x60] sm:$0xff] }
 0x2d6   : > { %1538 = vmatpush.msrb.mxu1 %v1527_v12 }
 0x2d7   : > { %v1388_v19 = vadd.f32 %v1370_v14, %v1314_v15  ;;  %v1526_v14 = vld [vmem:[%s2694_s7 + $0x58] sm:$0xff] }
 0x2d8   : > { %1539 = vmatpush.msrb.mxu1 %v1526_v14 }
 0x2d9   : > { %1394 = vst.msk [vmem:[#allocation4] sm:$0xff] %vm422_vm0, %v1388_v19 }
 0x2dc   : > { %v1299_v51 = vpop.f32.mrf.mxu2 }
 0x2dd   : > { %v1373_v21 = vpop.f32.mrf.mxu3  ;;  %v1315_v22 = vadd.f32 %v1299_v51, %v1241_v20 }
 0x2df   : > { %v1389_v25 = vadd.f32 %v1373_v21, %v1315_v22  ;;  %v1525_v22 = vld [vmem:[%s2694_s7 + $0x50] sm:$0xff] }
 0x2e0   : > { %1540 = vmatpush.msrb.mxu1 %v1525_v22 }
 0x2e1   : > { %1395 = vst.msk [vmem:[#allocation4 + $0x8] sm:$0xff] %vm422_vm0, %v1389_v25  ;;  %v1522_v25 = vld [vmem:[%s2694_s7 + $0x38] sm:$0xff] }
 0x2e2   : > { %1541 = vmatpush.msrb.mxu1 %v1524_v23 }
 0x2e4   : > { %v1302_v58 = vpop.f32.mrf.mxu2  ;;  %1542 = vmatpush.msrb.mxu1 %v1523_v24 }
 0x2e5   : > { %v1376_v27 = vpop.f32.mrf.mxu3  ;;  %v1316_v28 = vadd.f32 %v1302_v58, %v1242_v26  ;;  %v1521_v26 = vld [vmem:[%s2694_s7 + $0x30] sm:$0xff]  ;;  %v1520_v58 = vld [vmem:[%s2694_s7 + $0x28] sm:$0xff] }
 0x2e6   : > { %1543 = vmatpush.msrb.mxu1 %v1522_v25 }
 0x2e7   : > { %v1390_v30 = vadd.f32 %v1376_v27, %v1316_v28  ;;  %v1519_v27 = vld [vmem:[%s2694_s7 + $0x20] sm:$0xff]  ;;  %v1518_v28 = vld [vmem:[%s2694_s7 + $0x18] sm:$0xff] }
 0x2e8   : > { %v1400_v32 = vld [vmem:[#allocation4] ss:$2 sm:$0xff]  ;;  %v1406_v34 = vld [vmem:[#allocation4 + $0x1] ss:$2 sm:$0xff]  ;;  %1544 = vmatpush.msrb.mxu1 %v1521_v26 }
 0x2e9   : > { %1396 = vst.msk [vmem:[#allocation4 + $0x10] sm:$0xff] %vm422_vm0, %v1390_v30  ;;  %v1411_v35 = vmax.f32 %v1400_v32, %v1406_v34  ;;  %v1515_v30 = vld [vmem:[%s2694_s7] sm:$0xff]  ;;  %v1559_v32 = vld [vmem:[%s2696_s9 + $0x18] sm:$0xff]  ;;  %v1558_v34 = vld [vmem:[%s2696_s9 + $0x10] sm:$0xff] }
 0x2ea   : > { %1545 = vmatpush.msrb.mxu1 %v1520_v58 }
 0x2eb   : > { %v1418_v38 = vadd.f32 %v1866_v31, %v1411_v35 }
 0x2ec   : > { %v1305_v40 = vpop.f32.mrf.mxu2  ;;  %1546 = vmatpush.msrb.mxu1 %v1519_v27 }
 0x2ed   : > { %v1379_v41 = vpop.f32.mrf.mxu3  ;;  %v1317_v42 = vadd.f32 %v1305_v40, %v1243_v37  ;;  %1813 = vmatmul.msk.f32.vlgmr.msra.gmra.mxu0 %vm422_vm0, %v1418_v38  ;;  %v1557_v40 = vld [vmem:[%s2696_s9 + $0x8] sm:$0xff] }
 0x2ee   : > { %1547 = vmatpush.msrb.mxu1 %v1518_v28 }
 0x2ef   : > { %v1391_v45 = vadd.f32 %v1379_v41, %v1317_v42  ;;  %v1556_v41 = vld [vmem:[%s2696_s9] sm:$0xff] }
 0x2f0   : > { %1548 = vmatpush.msrb.mxu1 %v1517_v18  ;;  %v1867_v42 = vld [vmem:[%s2695_s8] ss:$0 sm:$0xff] }
 0x2f1   : > { %1397 = vst.msk [vmem:[#allocation4 + $0x18] sm:$0xff] %vm422_vm0, %v1391_v45 }
 0x2f2   : > { %1549 = vmatpush.msrb.mxu1 %v1516_v29 }
 0x2f4   : > { %v1308_v48 = vpop.f32.mrf.mxu2  ;;  %1550 = vmatpush.msrb.mxu1 %v1515_v30 }
 0x2f5   : > { %v1382_v33 = vpop.f32.mrf.mxu3  ;;  %v1318_v49 = vadd.f32 %v1308_v48, %v1244_v47  ;;  %v1868_v47 = vld [vmem:[%s2697_s10] ss:$0 sm:$0xff] }
 0x2f6   : > { %1579 = vmatpush.msra.mxu1 %v1559_v32 }
 0x2f7   : > { %v1392_v52 = vadd.f32 %v1382_v33, %v1318_v49 }
 0x2f8   : > { %v1402_v53 = vld [vmem:[#allocation4 + $0x10] ss:$2 sm:$0xff]  ;;  %v1408_v54 = vld [vmem:[#allocation4 + $0x11] ss:$2 sm:$0xff]  ;;  %1580 = vmatpush.msra.mxu1 %v1558_v34 }
 0x2f9   : > { %1398 = vst.msk [vmem:[#allocation4 + $0x20] sm:$0xff] %vm422_vm0, %v1392_v52  ;;  %v1412_v36 = vmax.f32 %v1402_v53, %v1408_v54 }
 0x2fa   : > { %1581 = vmatpush.msra.mxu1 %v1557_v40 }
 0x2fb   : > { %v1419_v57 = vadd.f32 %v1866_v31, %v1412_v36 }
 0x2fc   : > { %v1311_v59 = vpop.f32.mrf.mxu2  ;;  %1582 = vmatpush.msra.mxu1 %v1556_v41 }
 0x2fd   : > { %v1319_v60 = vadd.f32 %v1311_v59, %v1245_v56  ;;  %1814 = vmatmul.msk.f32.gmra.mxu0 %vm422_vm0, %v1419_v57  ;;  %v1385_v61 = vpop.f32.mrf.mxu3 }
 0x2ff   : > { %v1393_v62 = vadd.f32 %v1385_v61, %v1319_v60 }
 0x301   : > { %1399 = vst.msk [vmem:[#allocation4 + $0x28] sm:$0xf] %vm1028_vm5, %v1393_v62 }
 0x308   : > { %v1404_v63 = vld [vmem:[#allocation4 + $0x20] ss:$2 sm:$0x3f]  ;;  %v1410_v0 = vld [vmem:[#allocation4 + $0x21] ss:$2 sm:$0x3f] }
 0x309   : > { %v1413_v1 = vmax.f32 %v1404_v63, %v1410_v0 }
 0x30b   : > { %v1420_v2 = vadd.f32 %v1866_v31, %v1413_v1 }
 0x30d   : > { %1815 = vmatmul.msk.f32.gmra.mxu0 %vm422_vm0, %v1420_v2 }
 0x36a   : > { %v1455_v39 = vpop.f32.mrf.mxu0 }
 0x36b   : > { %1467 = vrot.lane.b32.xlu2 %v1455_v39, %s1935_s24 }
 0x37a   : > { %v1458_v3 = vpop.f32.mrf.mxu0 }
 0x37b   : > { %1469 = vrot.lane.b32.xlu0 %v1458_v3, %s1935_s24 }
 0x38a   : > { %v1461_v4 = vpop.f32.mrf.mxu0 }
 0x38b   : > { %1471 = vrot.lane.b32.xlu1 %v1461_v4, %s1935_s24 }
 0x3c5   : > { %v1468_v5 = vpop.permute.xlu2 %1467 }
 0x3c6   : > { %v1476_v6 = vmax.f32 %v1455_v39, %v1468_v5 }
 0x3c8   : > { %v1479_v7 = vmax.f32 %v1476_v6, 0.0 }
 0x3ca   : > { %1483 = vst.msk [vmem:[#allocation5] sm:$0xff] %vm1482_vm7, %v1479_v7 }
 0x3ed   : > { %v1470_v9 = vpop.permute.xlu0 %1469 }
 0x3ee   : > { %v1477_v11 = vmax.f32 %v1458_v3, %v1470_v9 }
 0x3f0   : > { %v1480_v13 = vmax.f32 %v1477_v11, 0.0 }
 0x3f2   : > { %1484 = vst.msk [vmem:[#allocation5 + $0x8] sm:$0xff] %vm1482_vm7, %v1480_v13 }
 0x3fd   : > { %v1472_v15 = vpop.permute.xlu1 %1471 }
 0x3fe   : > { %v1478_v16 = vmax.f32 %v1461_v4, %v1472_v15 }
 0x400   : > { %v1481_v17 = vmax.f32 %v1478_v16, 0.0 }
 0x402   : > { %1486 = vst.msk [vmem:[#allocation5 + $0x10] sm:$0x3f] %vm1485_vm8, %v1481_v17 }
 0x409   : > { %v1507_v19 = vld [vmem:[#allocation5 + $0x3] ss:$6 sm:$0xf]  ;;  %v1499_v20 = vld [vmem:[#allocation5 + $0x2] ss:$6 sm:$0xf] }
 0x40a   : > { %1509 = vrot.lane.b32.xlu1 %v1507_v19, %s1935_s24  ;;  %1501 = vrot.lane.b32.xlu0 %v1499_v20, %s1933_s19  ;;  %v1491_v51 = vld [vmem:[#allocation5 + $0x1] ss:$6 sm:$0xf]  ;;  %v1487_v21 = vld [vmem:[#allocation5] ss:$6 sm:$0xf] }
 0x40b   : > { %1493 = vrot.lane.b32.xlu2 %v1491_v51, %s1936_s25  ;;  %1489 = vst.msk [vmem:[#allocation6] sm:$0xf] %vm1488_vm9, %v1487_v21  ;;  %s1603_s19 = sshll.u32 %s1599_s12, 4  ;;  %s1589_s24 = scalar_lea.sflag [#allocation8], %s377_s15  ;;  %s1604_s19 = int_to_ptr.hbm [resolvable:$true] %s1603_s19 }
 0x40c   : > { %s1883_s0 = sshra.s32 %s1604_s19, 4  ;;  %s1884_s0 = int_to_ptr.hbm [resolvable:$true] %s1883_s0 }
 0x40d   : > { %s1885_s21 = scalar_lea.hbm %s1884_s0, 4  ;;  %p1890_p0 = scmp.lt.s32.totalorder %s1884_s0, %s2698_s11 }
 0x40e   : > { %p1886_p11 = scmp.ne.s32.totalorder %s1884_s0, %s1885_s21  ;;  %p1891_p1 = scmp.lt.s32.totalorder %s1889_s29, %s1885_s21 }
 0x410   : > { %p1887_p12 = pnand %p1886_p11, %p2035_p5  ;;  %p1892_p2 = por %p1891_p1, %p1890_p0 }
 0x412   : > { %p1888_p13 = pneg %p1887_p12 }
 0x414   : > { %p1893_p3 = pnand %p1892_p2, %p1888_p13 }
 0x465   : > { %v1494_v31 = vpop.permute.xlu2 %1493 }
 0x466   : > { %1497 = vst.msk [vmem:[#allocation6] sm:$0xf] %vm1496_vm10, %v1494_v31 }
 0x47c   : > { %v1510_v35 = vpop.permute.xlu1 %1509  ;;  %v1502_v37 = vpop.permute.xlu0 %1501 }
 0x47d   : > { %1505 = vst.msk [vmem:[#allocation6] sm:$0xf] %vm1504_vm11, %v1502_v37 }
 0x47e   : > { %1513 = vst.msk [vmem:[#allocation6] sm:$0xf] %vm1512_vm12, %v1510_v35 }
 0x485   : > { %v1514_v38 = vld [vmem:[#allocation6] sm:$0xf] }
 0x486   : > { %1551 = vmatmul.f32.vlgmr.msrb.gmra.mxu1 %v1514_v38 }
 0x503   : > { %v1552_v43 = vpop.f32.mrf.mxu1 }
 0x504   : > { %v1553_v45 = vadd.f32 %v1867_v42, %v1552_v43 }
 0x506   : > { %v1555_v46 = vmax.f32 %v1553_v45, 0.0 }
 0x508   : > { %1816 = vmatmul.msk.f32.vlgmr.msra.gmra.mxu1 %vm1482_vm7, %v1555_v46 }
 0x585   : > { %v1584_v48 = vpop.f32.mrf.mxu1 }
 0x586   : > { %v1585_v33 = vadd.f32 %v1868_v47, %v1584_v48 }
 0x588   : > { %1587 = vst [vmem:[%s379_s26] sm:$0xf] %v1585_v33 }
 0x589   : > { %1896 = shalt.err (!%p1893_p3)
}
 0x58a   : > { %1822 = dma.vmem_to_hbm [thread:$0]  (%p2035_p5), %s1602_s14, 64, %s1604_s19, %s1589_s24  }
 0x58b PF: > { %p1828_p4 = scmp.ge.s32.totalorder %s1931_s20, 2  ;;  %s1615_s15 = sand.u32 1, %s1919_s17  }
 0x58c   : > { %s1616_s12 = scalar_lea.sflag [#allocation8], %s1615_s15 }
 0x58d   : > { %p1825_p7 = pnand %p1828_p4, %p2039_p6 }
 0x58f   : > { %p1826_p8 = pneg %p1825_p7 }
 0x591   : > { %1914 = dma.done.wait (%p1826_p8), %s1616_s12, 64  }
 0x592   : > { %1916 = vsyncadd (%p1826_p8), %s1616_s12, 4294967232  ;;  %s2706_s0 = sld [smem:[#allocation10_spill]]  ;;  %p21_p9 = scmp.ge.s32.totalorder %s2022_s23, 4  }
 0x593   : > { %s2707_s19 = sld [smem:[#allocation11_spill]]  ;;  %s2708_s17 = smov %s1923_s18 }
 0x594   : > { %s2710_s20 = smov %s2022_s23  ;;  %23 = sbr.rel (!%p21_p9) target bundleno = 5 (0x5), region = 124 }
 0x598   : > { %s2709_s18 = smov %s2706_s0 }
 0x599   :  { %1622 = vsyncpa [#allocation8], 1 }
 0x59a   :  { %1624 = vsyncpa [#allocation8 + $0x1], 1 }

</bundles_post_ra>
